<compile_context>
chip_gen: v7x
topology: tpu7x:2x2x1
jax: 0.10.0
libtpu: 0.0.40
codegen_flags: <defaults>
</compile_context>

<pallas_src>
import jax
import jax.numpy as jnp
from jax.experimental import pallas as pl
from jax.experimental.pallas import tpu as pltpu

# ---- small, TPU-friendly hyper-parameters (scaled-down from the reference) ----
D_MODEL = 128        # reference: 768
N_HEADS = 4          # reference: 8
D_K = D_V = 32       # reference: 64
D_FF = 256           # reference: 2048
N_LAYERS = 2         # reference: 6
VOCAB_SIZE = 50
MAX_POS = 64
LN_EPS = 1e-5        # PyTorch nn.LayerNorm default
COMPUTE_DTYPE = jnp.bfloat16   # MXU operand dtype (f32 accumulation everywhere)


def _layernorm(x, g, b):
    mu = jnp.mean(x, axis=-1, keepdims=True)
    var = jnp.mean((x - mu) ** 2, axis=-1, keepdims=True)
    return (x - mu) * jax.lax.rsqrt(var + LN_EPS) * g + b


def decoder_kernel(x_ref, mask_ref,
                   wqkv_ref, wo_ref, ln1g_ref, ln1b_ref,
                   w1_ref, w2_ref, ln2g_ref, ln2b_ref,
                   out_ref, attn_ref, ctx_ref):
    """All N_LAYERS decoder layers over the whole [B*S, D] activation slab.

    x_ref:    [B*S, D]          mask_ref: [B, S, S]   (>0 => masked)
    wqkv_ref: [L, D, 3*H*dk]    wo_ref:   [L, H*dv, D]
    ln*_ref:  [L, 1, D]         w1_ref:   [L, D, d_ff]   w2_ref: [L, d_ff, D]
    out_ref:  [B*S, D]          attn_ref: [L*H, B, S, S]
    ctx_ref:  [B*S, H*dv]       (VMEM scratch for the fused per-head contexts)
    """
    B, S = mask_ref.shape[0], mask_ref.shape[1]
    hdk = N_HEADS * D_K

    x = x_ref[...]                              # [B*S, D] f32, resident across layers
    masked = mask_ref[...] > 0.0                # hoisted once for all layers/heads

    for l in range(N_LAYERS):                   # layers fused: no HBM round-trip of x
        # --- fused QKV projection: one [BS,D]@[D,3*H*dk] MXU op (W_Q pre-scaled) ---
        qkv = jnp.dot(x.astype(COMPUTE_DTYPE), wqkv_ref[l],
                      preferred_element_type=jnp.float32)            # [BS, 3*H*dk]

        head_attn = []
        for h in range(N_HEADS):                # H=4 small static loop; B batched in
            qh = qkv[:, h * D_K:(h + 1) * D_K].reshape(B, S, D_K)
            kh = qkv[:, hdk + h * D_K: hdk + (h + 1) * D_K].reshape(B, S, D_K)
            vh = qkv[:, 2 * hdk + h * D_V: 2 * hdk + (h + 1) * D_V].reshape(B, S, D_V)

            scores = jnp.einsum("bqd,bkd->bqk", qh, kh,
                                preferred_element_type=jnp.float32)  # [B, S, S]
            scores = jnp.where(masked, jnp.float32(-1e9), scores)
            m = jnp.max(scores, axis=-1, keepdims=True)
            e = jnp.exp(scores - m)
            attn = e * pl.reciprocal(jnp.sum(e, axis=-1, keepdims=True), approx=True)
            head_attn.append(attn)

            ctx = jnp.einsum("bqk,bkd->bqd", attn, vh,
                             preferred_element_type=jnp.float32)     # [B, S, dv]
            ctx_ref[:, h * D_V:(h + 1) * D_V] = ctx.reshape(B * S, D_V)

        # single consolidated store of this layer's attention maps
        attn_ref[l * N_HEADS:(l + 1) * N_HEADS] = jnp.stack(head_attn, axis=0)

        # --- output projection: ONE [BS, H*dv] @ [H*dv, D] matmul ---
        attn_out = jnp.dot(ctx_ref[...].astype(COMPUTE_DTYPE), wo_ref[l],
                           preferred_element_type=jnp.float32)       # [BS, D]
        y = _layernorm(attn_out + x, ln1g_ref[l], ln1b_ref[l])

        # --- position-wise feed-forward ---
        h1 = jnp.maximum(jnp.dot(y.astype(COMPUTE_DTYPE), w1_ref[l],
                                 preferred_element_type=jnp.float32), 0.0)
        h2 = jnp.dot(h1.astype(COMPUTE_DTYPE), w2_ref[l],
                     preferred_element_type=jnp.float32)
        x = _layernorm(h2 + y, ln2g_ref[l], ln2b_ref[l])

    out_ref[...] = x


def _full_block(shape):
    ndim = len(shape)
    return pl.BlockSpec(shape, lambda i, _n=ndim: (0,) * _n)


def fuse_params(layer_params):
    """Fuse W_Q|W_K|W_V (with 1/sqrt(dk) folded into W_Q), stack all layers along a
    leading axis, and cast matmul weights to bf16 (LayerNorm params stay f32)."""
    scale = 1.0 / (float(D_K) ** 0.5)
    wqkv, wo, ln1g, ln1b, w1, w2, ln2g, ln2b = ([] for _ in range(8))
    for (q, k, v, o, g1, b1, f1, f2, g2, b2) in layer_params:
        wqkv.append(jnp.concatenate([q * scale, k, v], axis=1))     # [D, 3*H*dk]
        wo.append(o); w1.append(f1); w2.append(f2)
        ln1g.append(g1); ln1b.append(b1); ln2g.append(g2); ln2b.append(b2)
    cd = COMPUTE_DTYPE
    return (jnp.stack(wqkv).astype(cd), jnp.stack(wo).astype(cd),
            jnp.stack(ln1g), jnp.stack(ln1b),
            jnp.stack(w1).astype(cd), jnp.stack(w2).astype(cd),
            jnp.stack(ln2g), jnp.stack(ln2b))


def build_masks(dec_inputs):
    """get_attn_pad_mask + get_attn_subsequence_mask, combined with > 0."""
    B, S = dec_inputs.shape
    pad = (dec_inputs == 0)[:, None, :]                       # [B, 1, S]
    pad = jnp.broadcast_to(pad, (B, S, S)).astype(jnp.int32)  # [B, S, S]
    subseq = jnp.triu(jnp.ones((S, S), dtype=jnp.int32), k=1)[None, :, :]
    return ((pad + subseq) > 0).astype(jnp.float32)           # 1.0 => masked


def decoder_forward(dec_inputs, tgt_emb, pos_emb, fused_params):
    """Full Decoder.forward. dec_inputs: [B, S] int32 token ids."""
    B, S = dec_inputs.shape
    pos = jnp.broadcast_to(jnp.arange(S, dtype=jnp.int32)[None, :], (B, S))
    # TODO(synk): embedding gather stays in plain JAX (no clean dense Pallas equivalent).
    x = jnp.take(tgt_emb, dec_inputs, axis=0) + jnp.take(pos_emb, pos, axis=0)
    mask = build_masks(dec_inputs)
    x2d = x.reshape(B * S, D_MODEL)

    wqkv, wo, ln1g, ln1b, w1, w2, ln2g, ln2b = fused_params
    args = (x2d, mask, wqkv, wo, ln1g, ln1b, w1, w2, ln2g, ln2b)

    out2d, attn_flat = pl.pallas_call(
        decoder_kernel,
        out_shape=(jax.ShapeDtypeStruct((B * S, D_MODEL), jnp.float32),
                   jax.ShapeDtypeStruct((N_LAYERS * N_HEADS, B, S, S), jnp.float32)),
        grid=(1,),
        in_specs=[_full_block(a.shape) for a in args],
        out_specs=(_full_block((B * S, D_MODEL)),
                   _full_block((N_LAYERS * N_HEADS, B, S, S))),
        scratch_shapes=[pltpu.VMEM((B * S, N_HEADS * D_V), jnp.float32)],
        # TODO(synk): single grid step => no parallel axis to shard over v7x's 2 TCs;
        # at these tiny shapes removing per-step pipeline overhead is the bigger win.
        compiler_params=pltpu.CompilerParams(dimension_semantics=("arbitrary",)),
    )(*args)

    out = out2d.reshape(B, S, D_MODEL)
    attn = attn_flat.reshape(N_LAYERS, N_HEADS, B, S, S).transpose(0, 2, 1, 3, 4)
    return out, [attn[l] for l in range(N_LAYERS)]


# ----------------------- pure-JAX reference (for validation) -----------------------
def _ref_layer(x, mask, params):
    (wq, wk, wv, wo, ln1g, ln1b, w1, w2, ln2g, ln2b) = params
    B, S, D = x.shape
    q = (x @ wq).reshape(B, S, N_HEADS, D_K).transpose(0, 2, 1, 3)
    k = (x @ wk).reshape(B, S, N_HEADS, D_K).transpose(0, 2, 1, 3)
    v = (x @ wv).reshape(B, S, N_HEADS, D_V).transpose(0, 2, 1, 3)
    scores = jnp.einsum("bhqd,bhkd->bhqk", q, k) / jnp.sqrt(jnp.float32(D_K))
    scores = jnp.where(mask[:, None] > 0.0, -1e9, scores)
    attn = jax.nn.softmax(scores, axis=-1)
    ctx = jnp.einsum("bhqk,bhkd->bhqd", attn, v).transpose(0, 2, 1, 3).reshape(B, S, -1)
    y = _layernorm(ctx @ wo + x, ln1g[0], ln1b[0])
    z = _layernorm(jnp.maximum(y @ w1, 0.0) @ w2 + y, ln2g[0], ln2b[0])
    return z, attn


def _ref_decoder(dec_inputs, tgt_emb, pos_emb, layer_params):
    B, S = dec_inputs.shape
    pos = jnp.broadcast_to(jnp.arange(S, dtype=jnp.int32)[None, :], (B, S))
    x = jnp.take(tgt_emb, dec_inputs, axis=0) + jnp.take(pos_emb, pos, axis=0)
    mask = build_masks(dec_inputs)
    attns = []
    for p in layer_params:
        x, a = _ref_layer(x, mask, p)
        attns.append(a)
    return x, attns


# ----------------------------------- params ----------------------------------------
def init_params(key):
    def dense(k, fan_in, fan_out):
        return (jax.random.normal(k, (fan_in, fan_out), jnp.float32)
                / jnp.sqrt(jnp.float32(fan_in)))

    keys = jax.random.split(key, 2 + 6 * N_LAYERS)
    tgt_emb = jax.random.normal(keys[0], (VOCAB_SIZE, D_MODEL), jnp.float32) * 0.02
    pos_emb = jax.random.normal(keys[1], (MAX_POS, D_MODEL), jnp.float32) * 0.02

    layer_params = []
    for l in range(N_LAYERS):
        k = keys[2 + 6 * l: 2 + 6 * (l + 1)]
        wq = dense(k[0], D_MODEL, N_HEADS * D_K)
        wk = dense(k[1], D_MODEL, N_HEADS * D_K)
        wv = dense(k[2], D_MODEL, N_HEADS * D_V)
        wo = dense(k[3], N_HEADS * D_V, D_MODEL)
        w1 = dense(k[4], D_MODEL, D_FF)
        w2 = dense(k[5], D_FF, D_MODEL)
        ln1g = jnp.ones((1, D_MODEL), jnp.float32)
        ln1b = jnp.zeros((1, D_MODEL), jnp.float32)
        ln2g = jnp.ones((1, D_MODEL), jnp.float32)
        ln2b = jnp.zeros((1, D_MODEL), jnp.float32)
        layer_params.append((wq, wk, wv, wo, ln1g, ln1b, w1, w2, ln2g, ln2b))
    return tgt_emb, pos_emb, layer_params


if __name__ == "__main__":
    key = jax.random.PRNGKey(0)
    k_tok, k_param = jax.random.split(key)

    B, S = 2, 8
    tok = jax.random.randint(k_tok, (B, S), 1, VOCAB_SIZE, dtype=jnp.int32)
    # add some padding (token id 0) to exercise the pad mask
    tok = tok.at[:, -2:].set(0)

    tgt_emb, pos_emb, layer_params = init_params(k_param)
    fused_params = fuse_params(layer_params)

    out, attns = decoder_forward(tok, tgt_emb, pos_emb, fused_params)
    out = jax.block_until_ready(out)
    attns = [jax.block_until_ready(a) for a in attns]

    # validate against pure-JAX f32 reference (kernel uses bf16 MXU operands, so
    # the comparison tolerance is loosened accordingly)
    ref_out, ref_attns = _ref_decoder(tok, tgt_emb, pos_emb, layer_params)
    assert out.shape == (B, S, D_MODEL)
    assert all(a.shape == (B, N_HEADS, S, S) for a in attns)
    assert jnp.allclose(out, ref_out, atol=5e-2, rtol=5e-2)
    for a, ra in zip(attns, ref_attns):
        assert jnp.allclose(a, ra, atol=4e-2, rtol=4e-2)

    print("KERNEL_OK")
</pallas_src>

<mosaic_0001>
module attributes {stable_mosaic.version = 11 : i64} {
  func.func @decoder_kernel(%arg0: i32, %arg1: memref<16x128xf32, #tpu.memory_space<vmem>>, %arg2: memref<2x8x8xf32, #tpu.memory_space<vmem>>, %arg3: memref<2x128x384xbf16, #tpu.memory_space<vmem>>, %arg4: memref<2x128x128xbf16, #tpu.memory_space<vmem>>, %arg5: memref<2x1x128xf32, #tpu.memory_space<vmem>>, %arg6: memref<2x1x128xf32, #tpu.memory_space<vmem>>, %arg7: memref<2x128x256xbf16, #tpu.memory_space<vmem>>, %arg8: memref<2x256x128xbf16, #tpu.memory_space<vmem>>, %arg9: memref<2x1x128xf32, #tpu.memory_space<vmem>>, %arg10: memref<2x1x128xf32, #tpu.memory_space<vmem>>, %arg11: memref<16x128xf32, #tpu.memory_space<vmem>>, %arg12: memref<8x2x8x8xf32, #tpu.memory_space<vmem>>, %arg13: memref<16x128xf32, #tpu.memory_space<vmem>>) attributes {dimension_semantics = [#tpu.dimension_semantics<arbitrary>], iteration_bounds = array<i64: 1>, scalar_prefetch = 0 : i64, scratch_operands = 1 : i64, tpu.core_type = #tpu.core_type<tc>, window_params = [{pipeline_mode = #tpu.pipeline_mode<synchronous>, transform_indices = @transform_0, window_bounds = array<i64: 16, 128>}, {pipeline_mode = #tpu.pipeline_mode<synchronous>, transform_indices = @transform_1, window_bounds = array<i64: 2, 8, 8>}, {pipeline_mode = #tpu.pipeline_mode<synchronous>, transform_indices = @transform_2, window_bounds = array<i64: 2, 128, 384>}, {pipeline_mode = #tpu.pipeline_mode<synchronous>, transform_indices = @transform_3, window_bounds = array<i64: 2, 128, 128>}, {pipeline_mode = #tpu.pipeline_mode<synchronous>, transform_indices = @transform_4, window_bounds = array<i64: 2, 1, 128>}, {pipeline_mode = #tpu.pipeline_mode<synchronous>, transform_indices = @transform_5, window_bounds = array<i64: 2, 1, 128>}, {pipeline_mode = #tpu.pipeline_mode<synchronous>, transform_indices = @transform_6, window_bounds = array<i64: 2, 128, 256>}, {pipeline_mode = #tpu.pipeline_mode<synchronous>, transform_indices = @transform_7, window_bounds = array<i64: 2, 256, 128>}, {pipeline_mode = #tpu.pipeline_mode<synchronous>, transform_indices = @transform_8, window_bounds = array<i64: 2, 1, 128>}, {pipeline_mode = #tpu.pipeline_mode<synchronous>, transform_indices = @transform_9, window_bounds = array<i64: 2, 1, 128>}, {pipeline_mode = #tpu.pipeline_mode<synchronous>, transform_indices = @transform_10, window_bounds = array<i64: 16, 128>}, {pipeline_mode = #tpu.pipeline_mode<synchronous>, transform_indices = @transform_11, window_bounds = array<i64: 8, 2, 8, 8>}]} {
    %c0 = arith.constant 0 : index
    %c0_0 = arith.constant 0 : index
    %0 = vector.load %arg1[%c0, %c0_0] : memref<16x128xf32, #tpu.memory_space<vmem>>, vector<16x128xf32>
    %c0_1 = arith.constant 0 : index
    %c0_2 = arith.constant 0 : index
    %c0_3 = arith.constant 0 : index
    %1 = vector.load %arg2[%c0_1, %c0_2, %c0_3] : memref<2x8x8xf32, #tpu.memory_space<vmem>>, vector<2x8x8xf32>
    %cst = arith.constant 0.000000e+00 : f32
    %2 = vector.broadcast %cst : f32 to vector<2x8x8xf32>
    %3 = arith.cmpf ogt, %1, %2 : vector<2x8x8xf32>
    %4 = arith.truncf %0 : vector<16x128xf32> to vector<16x128xbf16>
    %c0_4 = arith.constant 0 : index
    %c0_5 = arith.constant 0 : index
    %c0_6 = arith.constant 0 : index
    %5 = vector.load %arg3[%c0_4, %c0_5, %c0_6] : memref<2x128x384xbf16, #tpu.memory_space<vmem>>, vector<1x128x384xbf16>
    %6 = vector.shape_cast %5 : vector<1x128x384xbf16> to vector<128x384xbf16>
    %cst_7 = arith.constant dense<0.000000e+00> : vector<16x384xf32>
    %7 = tpu.matmul %4, %6, %cst_7 {dimension_numbers = #tpu.dot_dimension_numbers<[1], [0], [0], [1], [0, 0, 1, 1], [], []>} : vector<16x128xbf16>, vector<128x384xbf16>, vector<16x384xf32> -> vector<16x384xf32>
    %8 = vector.extract_strided_slice %7 {offsets = [0, 0], sizes = [16, 32], strides = [1, 1]} : vector<16x384xf32> to vector<16x32xf32>
    %9 = vector.shape_cast %8 : vector<16x32xf32> to vector<2x8x32xf32>
    %10 = vector.extract_strided_slice %7 {offsets = [0, 128], sizes = [16, 32], strides = [1, 1]} : vector<16x384xf32> to vector<16x32xf32>
    %11 = vector.shape_cast %10 : vector<16x32xf32> to vector<2x8x32xf32>
    %12 = vector.extract_strided_slice %7 {offsets = [0, 256], sizes = [16, 32], strides = [1, 1]} : vector<16x384xf32> to vector<16x32xf32>
    %13 = vector.shape_cast %12 : vector<16x32xf32> to vector<2x8x32xf32>
    "tpu.trace_start"() <{level = 10 : i32, message = "bqd,bkd->bqk"}> : () -> ()
    %cst_8 = arith.constant dense<0.000000e+00> : vector<2x8x8xf32>
    %14 = tpu.matmul %9, %11, %cst_8 {dimension_numbers = #tpu.dot_dimension_numbers<[2], [2], [1], [1], [0, 0, 0, 1, 1, 1], [0], [0]>} : vector<2x8x32xf32>, vector<2x8x32xf32>, vector<2x8x8xf32> -> vector<2x8x8xf32>
    %cst_9 = arith.constant -1.000000e+09 : f32
    "tpu.trace_stop"() : () -> ()
    %15 = vector.broadcast %cst_9 : f32 to vector<2x8x8xf32>
    %16 = arith.select %3, %15, %14 : vector<2x8x8xi1>, vector<2x8x8xf32>
    %cst_10 = arith.constant dense<0xFF800000> : vector<2x8xf32>
    %17 = vector.multi_reduction <maximumf>, %16, %cst_10 [2] : vector<2x8x8xf32> to vector<2x8xf32>
    %18 = vector.shape_cast %17 : vector<2x8xf32> to vector<2x8x1xf32>
    %19 = vector.broadcast %18 : vector<2x8x1xf32> to vector<2x8x8xf32>
    %20 = arith.subf %16, %19 : vector<2x8x8xf32>
    %21 = math.exp %20 : vector<2x8x8xf32>
    %cst_11 = arith.constant dense<0.000000e+00> : vector<2x8xf32>
    %22 = vector.multi_reduction <add>, %21, %cst_11 [2] : vector<2x8x8xf32> to vector<2x8xf32>
    %23 = vector.shape_cast %22 : vector<2x8xf32> to vector<2x8x1xf32>
    %24 = tpu.reciprocal %23 {approx = true} : vector<2x8x1xf32> -> vector<2x8x1xf32>
    %25 = vector.broadcast %24 : vector<2x8x1xf32> to vector<2x8x8xf32>
    %26 = arith.mulf %21, %25 : vector<2x8x8xf32>
    "tpu.trace_start"() <{level = 10 : i32, message = "bqk,bkd->bqd"}> : () -> ()
    %cst_12 = arith.constant dense<0.000000e+00> : vector<2x8x32xf32>
    %27 = tpu.matmul %26, %13, %cst_12 {dimension_numbers = #tpu.dot_dimension_numbers<[2], [1], [1], [2], [0, 0, 0, 1, 1, 2], [0], [0]>} : vector<2x8x8xf32>, vector<2x8x32xf32>, vector<2x8x32xf32> -> vector<2x8x32xf32>
    "tpu.trace_stop"() : () -> ()
    %28 = vector.shape_cast %27 : vector<2x8x32xf32> to vector<16x32xf32>
    %c0_13 = arith.constant 0 : index
    %c0_14 = arith.constant 0 : index
    %29 = vector.load %arg13[%c0_13, %c0_14] : memref<16x128xf32, #tpu.memory_space<vmem>>, vector<16x32xf32>
    tpu.vector_store %arg13[%c0_13, %c0_14], %28 {strides = array<i32>} : memref<16x128xf32, #tpu.memory_space<vmem>>, vector<16x32xf32>,
    %30 = vector.extract_strided_slice %7 {offsets = [0, 32], sizes = [16, 32], strides = [1, 1]} : vector<16x384xf32> to vector<16x32xf32>
    %31 = vector.shape_cast %30 : vector<16x32xf32> to vector<2x8x32xf32>
    %32 = vector.extract_strided_slice %7 {offsets = [0, 160], sizes = [16, 32], strides = [1, 1]} : vector<16x384xf32> to vector<16x32xf32>
    %33 = vector.shape_cast %32 : vector<16x32xf32> to vector<2x8x32xf32>
    %34 = vector.extract_strided_slice %7 {offsets = [0, 288], sizes = [16, 32], strides = [1, 1]} : vector<16x384xf32> to vector<16x32xf32>
    %35 = vector.shape_cast %34 : vector<16x32xf32> to vector<2x8x32xf32>
    "tpu.trace_start"() <{level = 10 : i32, message = "bqd,bkd->bqk"}> : () -> ()
    %cst_15 = arith.constant dense<0.000000e+00> : vector<2x8x8xf32>
    %36 = tpu.matmul %31, %33, %cst_15 {dimension_numbers = #tpu.dot_dimension_numbers<[2], [2], [1], [1], [0, 0, 0, 1, 1, 1], [0], [0]>} : vector<2x8x32xf32>, vector<2x8x32xf32>, vector<2x8x8xf32> -> vector<2x8x8xf32>
    %cst_16 = arith.constant -1.000000e+09 : f32
    "tpu.trace_stop"() : () -> ()
    %37 = vector.broadcast %cst_16 : f32 to vector<2x8x8xf32>
    %38 = arith.select %3, %37, %36 : vector<2x8x8xi1>, vector<2x8x8xf32>
    %cst_17 = arith.constant dense<0xFF800000> : vector<2x8xf32>
    %39 = vector.multi_reduction <maximumf>, %38, %cst_17 [2] : vector<2x8x8xf32> to vector<2x8xf32>
    %40 = vector.shape_cast %39 : vector<2x8xf32> to vector<2x8x1xf32>
    %41 = vector.broadcast %40 : vector<2x8x1xf32> to vector<2x8x8xf32>
    %42 = arith.subf %38, %41 : vector<2x8x8xf32>
    %43 = math.exp %42 : vector<2x8x8xf32>
    %cst_18 = arith.constant dense<0.000000e+00> : vector<2x8xf32>
    %44 = vector.multi_reduction <add>, %43, %cst_18 [2] : vector<2x8x8xf32> to vector<2x8xf32>
    %45 = vector.shape_cast %44 : vector<2x8xf32> to vector<2x8x1xf32>
    %46 = tpu.reciprocal %45 {approx = true} : vector<2x8x1xf32> -> vector<2x8x1xf32>
    %47 = vector.broadcast %46 : vector<2x8x1xf32> to vector<2x8x8xf32>
    %48 = arith.mulf %43, %47 : vector<2x8x8xf32>
    "tpu.trace_start"() <{level = 10 : i32, message = "bqk,bkd->bqd"}> : () -> ()
    %cst_19 = arith.constant dense<0.000000e+00> : vector<2x8x32xf32>
    %49 = tpu.matmul %48, %35, %cst_19 {dimension_numbers = #tpu.dot_dimension_numbers<[2], [1], [1], [2], [0, 0, 0, 1, 1, 2], [0], [0]>} : vector<2x8x8xf32>, vector<2x8x32xf32>, vector<2x8x32xf32> -> vector<2x8x32xf32>
    "tpu.trace_stop"() : () -> ()
    %50 = vector.shape_cast %49 : vector<2x8x32xf32> to vector<16x32xf32>
    %c0_20 = arith.constant 0 : index
    %c32 = arith.constant 32 : index
    %51 = vector.load %arg13[%c0_20, %c32] : memref<16x128xf32, #tpu.memory_space<vmem>>, vector<16x32xf32>
    tpu.vector_store %arg13[%c0_20, %c32], %50 {strides = array<i32>} : memref<16x128xf32, #tpu.memory_space<vmem>>, vector<16x32xf32>,
    %52 = vector.extract_strided_slice %7 {offsets = [0, 64], sizes = [16, 32], strides = [1, 1]} : vector<16x384xf32> to vector<16x32xf32>
    %53 = vector.shape_cast %52 : vector<16x32xf32> to vector<2x8x32xf32>
    %54 = vector.extract_strided_slice %7 {offsets = [0, 192], sizes = [16, 32], strides = [1, 1]} : vector<16x384xf32> to vector<16x32xf32>
    %55 = vector.shape_cast %54 : vector<16x32xf32> to vector<2x8x32xf32>
    %56 = vector.extract_strided_slice %7 {offsets = [0, 320], sizes = [16, 32], strides = [1, 1]} : vector<16x384xf32> to vector<16x32xf32>
    %57 = vector.shape_cast %56 : vector<16x32xf32> to vector<2x8x32xf32>
    "tpu.trace_start"() <{level = 10 : i32, message = "bqd,bkd->bqk"}> : () -> ()
    %cst_21 = arith.constant dense<0.000000e+00> : vector<2x8x8xf32>
    %58 = tpu.matmul %53, %55, %cst_21 {dimension_numbers = #tpu.dot_dimension_numbers<[2], [2], [1], [1], [0, 0, 0, 1, 1, 1], [0], [0]>} : vector<2x8x32xf32>, vector<2x8x32xf32>, vector<2x8x8xf32> -> vector<2x8x8xf32>
    %cst_22 = arith.constant -1.000000e+09 : f32
    "tpu.trace_stop"() : () -> ()
    %59 = vector.broadcast %cst_22 : f32 to vector<2x8x8xf32>
    %60 = arith.select %3, %59, %58 : vector<2x8x8xi1>, vector<2x8x8xf32>
    %cst_23 = arith.constant dense<0xFF800000> : vector<2x8xf32>
    %61 = vector.multi_reduction <maximumf>, %60, %cst_23 [2] : vector<2x8x8xf32> to vector<2x8xf32>
    %62 = vector.shape_cast %61 : vector<2x8xf32> to vector<2x8x1xf32>
    %63 = vector.broadcast %62 : vector<2x8x1xf32> to vector<2x8x8xf32>
    %64 = arith.subf %60, %63 : vector<2x8x8xf32>
    %65 = math.exp %64 : vector<2x8x8xf32>
    %cst_24 = arith.constant dense<0.000000e+00> : vector<2x8xf32>
    %66 = vector.multi_reduction <add>, %65, %cst_24 [2] : vector<2x8x8xf32> to vector<2x8xf32>
    %67 = vector.shape_cast %66 : vector<2x8xf32> to vector<2x8x1xf32>
    %68 = tpu.reciprocal %67 {approx = true} : vector<2x8x1xf32> -> vector<2x8x1xf32>
    %69 = vector.broadcast %68 : vector<2x8x1xf32> to vector<2x8x8xf32>
    %70 = arith.mulf %65, %69 : vector<2x8x8xf32>
    "tpu.trace_start"() <{level = 10 : i32, message = "bqk,bkd->bqd"}> : () -> ()
    %cst_25 = arith.constant dense<0.000000e+00> : vector<2x8x32xf32>
    %71 = tpu.matmul %70, %57, %cst_25 {dimension_numbers = #tpu.dot_dimension_numbers<[2], [1], [1], [2], [0, 0, 0, 1, 1, 2], [0], [0]>} : vector<2x8x8xf32>, vector<2x8x32xf32>, vector<2x8x32xf32> -> vector<2x8x32xf32>
    "tpu.trace_stop"() : () -> ()
    %72 = vector.shape_cast %71 : vector<2x8x32xf32> to vector<16x32xf32>
    %c0_26 = arith.constant 0 : index
    %c64 = arith.constant 64 : index
    %73 = vector.load %arg13[%c0_26, %c64] : memref<16x128xf32, #tpu.memory_space<vmem>>, vector<16x32xf32>
    tpu.vector_store %arg13[%c0_26, %c64], %72 {strides = array<i32>} : memref<16x128xf32, #tpu.memory_space<vmem>>, vector<16x32xf32>,
    %74 = vector.extract_strided_slice %7 {offsets = [0, 96], sizes = [16, 32], strides = [1, 1]} : vector<16x384xf32> to vector<16x32xf32>
    %75 = vector.shape_cast %74 : vector<16x32xf32> to vector<2x8x32xf32>
    %76 = vector.extract_strided_slice %7 {offsets = [0, 224], sizes = [16, 32], strides = [1, 1]} : vector<16x384xf32> to vector<16x32xf32>
    %77 = vector.shape_cast %76 : vector<16x32xf32> to vector<2x8x32xf32>
    %78 = vector.extract_strided_slice %7 {offsets = [0, 352], sizes = [16, 32], strides = [1, 1]} : vector<16x384xf32> to vector<16x32xf32>
    %79 = vector.shape_cast %78 : vector<16x32xf32> to vector<2x8x32xf32>
    "tpu.trace_start"() <{level = 10 : i32, message = "bqd,bkd->bqk"}> : () -> ()
    %cst_27 = arith.constant dense<0.000000e+00> : vector<2x8x8xf32>
    %80 = tpu.matmul %75, %77, %cst_27 {dimension_numbers = #tpu.dot_dimension_numbers<[2], [2], [1], [1], [0, 0, 0, 1, 1, 1], [0], [0]>} : vector<2x8x32xf32>, vector<2x8x32xf32>, vector<2x8x8xf32> -> vector<2x8x8xf32>
    %cst_28 = arith.constant -1.000000e+09 : f32
    "tpu.trace_stop"() : () -> ()
    %81 = vector.broadcast %cst_28 : f32 to vector<2x8x8xf32>
    %82 = arith.select %3, %81, %80 : vector<2x8x8xi1>, vector<2x8x8xf32>
    %cst_29 = arith.constant dense<0xFF800000> : vector<2x8xf32>
    %83 = vector.multi_reduction <maximumf>, %82, %cst_29 [2] : vector<2x8x8xf32> to vector<2x8xf32>
    %84 = vector.shape_cast %83 : vector<2x8xf32> to vector<2x8x1xf32>
    %85 = vector.broadcast %84 : vector<2x8x1xf32> to vector<2x8x8xf32>
    %86 = arith.subf %82, %85 : vector<2x8x8xf32>
    %87 = math.exp %86 : vector<2x8x8xf32>
    %cst_30 = arith.constant dense<0.000000e+00> : vector<2x8xf32>
    %88 = vector.multi_reduction <add>, %87, %cst_30 [2] : vector<2x8x8xf32> to vector<2x8xf32>
    %89 = vector.shape_cast %88 : vector<2x8xf32> to vector<2x8x1xf32>
    %90 = tpu.reciprocal %89 {approx = true} : vector<2x8x1xf32> -> vector<2x8x1xf32>
    %91 = vector.broadcast %90 : vector<2x8x1xf32> to vector<2x8x8xf32>
    %92 = arith.mulf %87, %91 : vector<2x8x8xf32>
    "tpu.trace_start"() <{level = 10 : i32, message = "bqk,bkd->bqd"}> : () -> ()
    %cst_31 = arith.constant dense<0.000000e+00> : vector<2x8x32xf32>
    %93 = tpu.matmul %92, %79, %cst_31 {dimension_numbers = #tpu.dot_dimension_numbers<[2], [1], [1], [2], [0, 0, 0, 1, 1, 2], [0], [0]>} : vector<2x8x8xf32>, vector<2x8x32xf32>, vector<2x8x32xf32> -> vector<2x8x32xf32>
    "tpu.trace_stop"() : () -> ()
    %94 = vector.shape_cast %93 : vector<2x8x32xf32> to vector<16x32xf32>
    %c0_32 = arith.constant 0 : index
    %c96 = arith.constant 96 : index
    %95 = vector.load %arg13[%c0_32, %c96] : memref<16x128xf32, #tpu.memory_space<vmem>>, vector<16x32xf32>
    tpu.vector_store %arg13[%c0_32, %c96], %94 {strides = array<i32>} : memref<16x128xf32, #tpu.memory_space<vmem>>, vector<16x32xf32>,
    %96 = vector.shape_cast %26 : vector<2x8x8xf32> to vector<1x2x8x8xf32>
    %97 = vector.shape_cast %48 : vector<2x8x8xf32> to vector<1x2x8x8xf32>
    %98 = vector.shape_cast %70 : vector<2x8x8xf32> to vector<1x2x8x8xf32>
    %99 = vector.shape_cast %92 : vector<2x8x8xf32> to vector<1x2x8x8xf32>
    %100 = tpu.concatenate %96, %97, %98, %99 in 0 : vector<1x2x8x8xf32>, vector<1x2x8x8xf32>, vector<1x2x8x8xf32>, vector<1x2x8x8xf32> -> vector<4x2x8x8xf32>
    %c0_33 = arith.constant 0 : index
    %c0_34 = arith.constant 0 : index
    %c0_35 = arith.constant 0 : index
    %c0_36 = arith.constant 0 : index
    %101 = vector.load %arg12[%c0_33, %c0_34, %c0_35, %c0_36] : memref<8x2x8x8xf32, #tpu.memory_space<vmem>>, vector<4x2x8x8xf32>
    tpu.vector_store %arg12[%c0_33, %c0_34, %c0_35, %c0_36], %100 {strides = array<i32>} : memref<8x2x8x8xf32, #tpu.memory_space<vmem>>, vector<4x2x8x8xf32>,
    %c0_37 = arith.constant 0 : index
    %c0_38 = arith.constant 0 : index
    %102 = vector.load %arg13[%c0_37, %c0_38] : memref<16x128xf32, #tpu.memory_space<vmem>>, vector<16x128xf32>
    %103 = arith.truncf %102 : vector<16x128xf32> to vector<16x128xbf16>
    %c0_39 = arith.constant 0 : index
    %c0_40 = arith.constant 0 : index
    %c0_41 = arith.constant 0 : index
    %104 = vector.load %arg4[%c0_39, %c0_40, %c0_41] : memref<2x128x128xbf16, #tpu.memory_space<vmem>>, vector<1x128x128xbf16>
    %105 = vector.shape_cast %104 : vector<1x128x128xbf16> to vector<128x128xbf16>
    %cst_42 = arith.constant dense<0.000000e+00> : vector<16x128xf32>
    %106 = tpu.matmul %103, %105, %cst_42 {dimension_numbers = #tpu.dot_dimension_numbers<[1], [0], [0], [1], [0, 0, 1, 1], [], []>} : vector<16x128xbf16>, vector<128x128xbf16>, vector<16x128xf32> -> vector<16x128xf32>
    %107 = arith.addf %106, %0 : vector<16x128xf32>
    %c0_43 = arith.constant 0 : index
    %c0_44 = arith.constant 0 : index
    %c0_45 = arith.constant 0 : index
    %108 = vector.load %arg5[%c0_43, %c0_44, %c0_45] : memref<2x1x128xf32, #tpu.memory_space<vmem>>, vector<1x1x128xf32>
    %109 = vector.shape_cast %108 : vector<1x1x128xf32> to vector<1x128xf32>
    %c0_46 = arith.constant 0 : index
    %c0_47 = arith.constant 0 : index
    %c0_48 = arith.constant 0 : index
    %110 = vector.load %arg6[%c0_46, %c0_47, %c0_48] : memref<2x1x128xf32, #tpu.memory_space<vmem>>, vector<1x1x128xf32>
    %111 = vector.shape_cast %110 : vector<1x1x128xf32> to vector<1x128xf32>
    %cst_49 = arith.constant dense<0.000000e+00> : vector<16xf32>
    %112 = vector.multi_reduction <add>, %107, %cst_49 [1] : vector<16x128xf32> to vector<16xf32>
    %113 = vector.shape_cast %112 : vector<16xf32> to vector<16x1xf32>
    %cst_50 = arith.constant 1.280000e+02 : f32
    %114 = vector.broadcast %cst_50 : f32 to vector<16x1xf32>
    %115 = arith.divf %113, %114 : vector<16x1xf32>
    %116 = vector.broadcast %115 : vector<16x1xf32> to vector<16x128xf32>
    %117 = arith.subf %107, %116 : vector<16x128xf32>
    %118 = arith.mulf %117, %117 : vector<16x128xf32>
    %cst_51 = arith.constant dense<0.000000e+00> : vector<16xf32>
    %119 = vector.multi_reduction <add>, %118, %cst_51 [1] : vector<16x128xf32> to vector<16xf32>
    %120 = vector.shape_cast %119 : vector<16xf32> to vector<16x1xf32>
    %cst_52 = arith.constant 1.280000e+02 : f32
    %121 = vector.broadcast %cst_52 : f32 to vector<16x1xf32>
    %122 = arith.divf %120, %121 : vector<16x1xf32>
    %123 = vector.broadcast %115 : vector<16x1xf32> to vector<16x128xf32>
    %124 = arith.subf %107, %123 : vector<16x128xf32>
    %cst_53 = arith.constant 9.99999974E-6 : f32
    %125 = vector.broadcast %cst_53 : f32 to vector<16x1xf32>
    %126 = arith.addf %122, %125 : vector<16x1xf32>
    %127 = math.rsqrt %126 : vector<16x1xf32>
    %128 = vector.broadcast %127 : vector<16x1xf32> to vector<16x128xf32>
    %129 = arith.mulf %124, %128 : vector<16x128xf32>
    %130 = vector.broadcast %109 : vector<1x128xf32> to vector<16x128xf32>
    %131 = arith.mulf %129, %130 : vector<16x128xf32>
    %132 = vector.broadcast %111 : vector<1x128xf32> to vector<16x128xf32>
    %133 = arith.addf %131, %132 : vector<16x128xf32>
    %134 = arith.truncf %133 : vector<16x128xf32> to vector<16x128xbf16>
    %c0_54 = arith.constant 0 : index
    %c0_55 = arith.constant 0 : index
    %c0_56 = arith.constant 0 : index
    %135 = vector.load %arg7[%c0_54, %c0_55, %c0_56] : memref<2x128x256xbf16, #tpu.memory_space<vmem>>, vector<1x128x256xbf16>
    %136 = vector.shape_cast %135 : vector<1x128x256xbf16> to vector<128x256xbf16>
    %cst_57 = arith.constant dense<0.000000e+00> : vector<16x256xf32>
    %137 = tpu.matmul %134, %136, %cst_57 {dimension_numbers = #tpu.dot_dimension_numbers<[1], [0], [0], [1], [0, 0, 1, 1], [], []>} : vector<16x128xbf16>, vector<128x256xbf16>, vector<16x256xf32> -> vector<16x256xf32>
    %cst_58 = arith.constant 0.000000e+00 : f32
    %138 = vector.broadcast %cst_58 : f32 to vector<16x256xf32>
    %139 = arith.maximumf %137, %138 : vector<16x256xf32>
    %140 = arith.truncf %139 : vector<16x256xf32> to vector<16x256xbf16>
    %c0_59 = arith.constant 0 : index
    %c0_60 = arith.constant 0 : index
    %c0_61 = arith.constant 0 : index
    %141 = vector.load %arg8[%c0_59, %c0_60, %c0_61] : memref<2x256x128xbf16, #tpu.memory_space<vmem>>, vector<1x256x128xbf16>
    %142 = vector.shape_cast %141 : vector<1x256x128xbf16> to vector<256x128xbf16>
    %cst_62 = arith.constant dense<0.000000e+00> : vector<16x128xf32>
    %143 = tpu.matmul %140, %142, %cst_62 {dimension_numbers = #tpu.dot_dimension_numbers<[1], [0], [0], [1], [0, 0, 1, 1], [], []>} : vector<16x256xbf16>, vector<256x128xbf16>, vector<16x128xf32> -> vector<16x128xf32>
    %144 = arith.addf %143, %133 : vector<16x128xf32>
    %c0_63 = arith.constant 0 : index
    %c0_64 = arith.constant 0 : index
    %c0_65 = arith.constant 0 : index
    %145 = vector.load %arg9[%c0_63, %c0_64, %c0_65] : memref<2x1x128xf32, #tpu.memory_space<vmem>>, vector<1x1x128xf32>
    %146 = vector.shape_cast %145 : vector<1x1x128xf32> to vector<1x128xf32>
    %c0_66 = arith.constant 0 : index
    %c0_67 = arith.constant 0 : index
    %c0_68 = arith.constant 0 : index
    %147 = vector.load %arg10[%c0_66, %c0_67, %c0_68] : memref<2x1x128xf32, #tpu.memory_space<vmem>>, vector<1x1x128xf32>
    %148 = vector.shape_cast %147 : vector<1x1x128xf32> to vector<1x128xf32>
    %cst_69 = arith.constant dense<0.000000e+00> : vector<16xf32>
    %149 = vector.multi_reduction <add>, %144, %cst_69 [1] : vector<16x128xf32> to vector<16xf32>
    %150 = vector.shape_cast %149 : vector<16xf32> to vector<16x1xf32>
    %cst_70 = arith.constant 1.280000e+02 : f32
    %151 = vector.broadcast %cst_70 : f32 to vector<16x1xf32>
    %152 = arith.divf %150, %151 : vector<16x1xf32>
    %153 = vector.broadcast %152 : vector<16x1xf32> to vector<16x128xf32>
    %154 = arith.subf %144, %153 : vector<16x128xf32>
    %155 = arith.mulf %154, %154 : vector<16x128xf32>
    %cst_71 = arith.constant dense<0.000000e+00> : vector<16xf32>
    %156 = vector.multi_reduction <add>, %155, %cst_71 [1] : vector<16x128xf32> to vector<16xf32>
    %157 = vector.shape_cast %156 : vector<16xf32> to vector<16x1xf32>
    %cst_72 = arith.constant 1.280000e+02 : f32
    %158 = vector.broadcast %cst_72 : f32 to vector<16x1xf32>
    %159 = arith.divf %157, %158 : vector<16x1xf32>
    %160 = vector.broadcast %152 : vector<16x1xf32> to vector<16x128xf32>
    %161 = arith.subf %144, %160 : vector<16x128xf32>
    %cst_73 = arith.constant 9.99999974E-6 : f32
    %162 = vector.broadcast %cst_73 : f32 to vector<16x1xf32>
    %163 = arith.addf %159, %162 : vector<16x1xf32>
    %164 = math.rsqrt %163 : vector<16x1xf32>
    %165 = vector.broadcast %164 : vector<16x1xf32> to vector<16x128xf32>
    %166 = arith.mulf %161, %165 : vector<16x128xf32>
    %167 = vector.broadcast %146 : vector<1x128xf32> to vector<16x128xf32>
    %168 = arith.mulf %166, %167 : vector<16x128xf32>
    %169 = vector.broadcast %148 : vector<1x128xf32> to vector<16x128xf32>
    %170 = arith.addf %168, %169 : vector<16x128xf32>
    %171 = arith.truncf %170 : vector<16x128xf32> to vector<16x128xbf16>
    %c1 = arith.constant 1 : index
    %c0_74 = arith.constant 0 : index
    %c0_75 = arith.constant 0 : index
    %172 = vector.load %arg3[%c1, %c0_74, %c0_75] : memref<2x128x384xbf16, #tpu.memory_space<vmem>>, vector<1x128x384xbf16>
    %173 = vector.shape_cast %172 : vector<1x128x384xbf16> to vector<128x384xbf16>
    %cst_76 = arith.constant dense<0.000000e+00> : vector<16x384xf32>
    %174 = tpu.matmul %171, %173, %cst_76 {dimension_numbers = #tpu.dot_dimension_numbers<[1], [0], [0], [1], [0, 0, 1, 1], [], []>} : vector<16x128xbf16>, vector<128x384xbf16>, vector<16x384xf32> -> vector<16x384xf32>
    %175 = vector.extract_strided_slice %174 {offsets = [0, 0], sizes = [16, 32], strides = [1, 1]} : vector<16x384xf32> to vector<16x32xf32>
    %176 = vector.shape_cast %175 : vector<16x32xf32> to vector<2x8x32xf32>
    %177 = vector.extract_strided_slice %174 {offsets = [0, 128], sizes = [16, 32], strides = [1, 1]} : vector<16x384xf32> to vector<16x32xf32>
    %178 = vector.shape_cast %177 : vector<16x32xf32> to vector<2x8x32xf32>
    %179 = vector.extract_strided_slice %174 {offsets = [0, 256], sizes = [16, 32], strides = [1, 1]} : vector<16x384xf32> to vector<16x32xf32>
    %180 = vector.shape_cast %179 : vector<16x32xf32> to vector<2x8x32xf32>
    "tpu.trace_start"() <{level = 10 : i32, message = "bqd,bkd->bqk"}> : () -> ()
    %cst_77 = arith.constant dense<0.000000e+00> : vector<2x8x8xf32>
    %181 = tpu.matmul %176, %178, %cst_77 {dimension_numbers = #tpu.dot_dimension_numbers<[2], [2], [1], [1], [0, 0, 0, 1, 1, 1], [0], [0]>} : vector<2x8x32xf32>, vector<2x8x32xf32>, vector<2x8x8xf32> -> vector<2x8x8xf32>
    %cst_78 = arith.constant -1.000000e+09 : f32
    "tpu.trace_stop"() : () -> ()
    %182 = vector.broadcast %cst_78 : f32 to vector<2x8x8xf32>
    %183 = arith.select %3, %182, %181 : vector<2x8x8xi1>, vector<2x8x8xf32>
    %cst_79 = arith.constant dense<0xFF800000> : vector<2x8xf32>
    %184 = vector.multi_reduction <maximumf>, %183, %cst_79 [2] : vector<2x8x8xf32> to vector<2x8xf32>
    %185 = vector.shape_cast %184 : vector<2x8xf32> to vector<2x8x1xf32>
    %186 = vector.broadcast %185 : vector<2x8x1xf32> to vector<2x8x8xf32>
    %187 = arith.subf %183, %186 : vector<2x8x8xf32>
    %188 = math.exp %187 : vector<2x8x8xf32>
    %cst_80 = arith.constant dense<0.000000e+00> : vector<2x8xf32>
    %189 = vector.multi_reduction <add>, %188, %cst_80 [2] : vector<2x8x8xf32> to vector<2x8xf32>
    %190 = vector.shape_cast %189 : vector<2x8xf32> to vector<2x8x1xf32>
    %191 = tpu.reciprocal %190 {approx = true} : vector<2x8x1xf32> -> vector<2x8x1xf32>
    %192 = vector.broadcast %191 : vector<2x8x1xf32> to vector<2x8x8xf32>
    %193 = arith.mulf %188, %192 : vector<2x8x8xf32>
    "tpu.trace_start"() <{level = 10 : i32, message = "bqk,bkd->bqd"}> : () -> ()
    %cst_81 = arith.constant dense<0.000000e+00> : vector<2x8x32xf32>
    %194 = tpu.matmul %193, %180, %cst_81 {dimension_numbers = #tpu.dot_dimension_numbers<[2], [1], [1], [2], [0, 0, 0, 1, 1, 2], [0], [0]>} : vector<2x8x8xf32>, vector<2x8x32xf32>, vector<2x8x32xf32> -> vector<2x8x32xf32>
    "tpu.trace_stop"() : () -> ()
    %195 = vector.shape_cast %194 : vector<2x8x32xf32> to vector<16x32xf32>
    %c0_82 = arith.constant 0 : index
    %c0_83 = arith.constant 0 : index
    %196 = vector.load %arg13[%c0_82, %c0_83] : memref<16x128xf32, #tpu.memory_space<vmem>>, vector<16x32xf32>
    tpu.vector_store %arg13[%c0_82, %c0_83], %195 {strides = array<i32>} : memref<16x128xf32, #tpu.memory_space<vmem>>, vector<16x32xf32>,
    %197 = vector.extract_strided_slice %174 {offsets = [0, 32], sizes = [16, 32], strides = [1, 1]} : vector<16x384xf32> to vector<16x32xf32>
    %198 = vector.shape_cast %197 : vector<16x32xf32> to vector<2x8x32xf32>
    %199 = vector.extract_strided_slice %174 {offsets = [0, 160], sizes = [16, 32], strides = [1, 1]} : vector<16x384xf32> to vector<16x32xf32>
    %200 = vector.shape_cast %199 : vector<16x32xf32> to vector<2x8x32xf32>
    %201 = vector.extract_strided_slice %174 {offsets = [0, 288], sizes = [16, 32], strides = [1, 1]} : vector<16x384xf32> to vector<16x32xf32>
    %202 = vector.shape_cast %201 : vector<16x32xf32> to vector<2x8x32xf32>
    "tpu.trace_start"() <{level = 10 : i32, message = "bqd,bkd->bqk"}> : () -> ()
    %cst_84 = arith.constant dense<0.000000e+00> : vector<2x8x8xf32>
    %203 = tpu.matmul %198, %200, %cst_84 {dimension_numbers = #tpu.dot_dimension_numbers<[2], [2], [1], [1], [0, 0, 0, 1, 1, 1], [0], [0]>} : vector<2x8x32xf32>, vector<2x8x32xf32>, vector<2x8x8xf32> -> vector<2x8x8xf32>
    %cst_85 = arith.constant -1.000000e+09 : f32
    "tpu.trace_stop"() : () -> ()
    %204 = vector.broadcast %cst_85 : f32 to vector<2x8x8xf32>
    %205 = arith.select %3, %204, %203 : vector<2x8x8xi1>, vector<2x8x8xf32>
    %cst_86 = arith.constant dense<0xFF800000> : vector<2x8xf32>
    %206 = vector.multi_reduction <maximumf>, %205, %cst_86 [2] : vector<2x8x8xf32> to vector<2x8xf32>
    %207 = vector.shape_cast %206 : vector<2x8xf32> to vector<2x8x1xf32>
    %208 = vector.broadcast %207 : vector<2x8x1xf32> to vector<2x8x8xf32>
    %209 = arith.subf %205, %208 : vector<2x8x8xf32>
    %210 = math.exp %209 : vector<2x8x8xf32>
    %cst_87 = arith.constant dense<0.000000e+00> : vector<2x8xf32>
    %211 = vector.multi_reduction <add>, %210, %cst_87 [2] : vector<2x8x8xf32> to vector<2x8xf32>
    %212 = vector.shape_cast %211 : vector<2x8xf32> to vector<2x8x1xf32>
    %213 = tpu.reciprocal %212 {approx = true} : vector<2x8x1xf32> -> vector<2x8x1xf32>
    %214 = vector.broadcast %213 : vector<2x8x1xf32> to vector<2x8x8xf32>
    %215 = arith.mulf %210, %214 : vector<2x8x8xf32>
    "tpu.trace_start"() <{level = 10 : i32, message = "bqk,bkd->bqd"}> : () -> ()
    %cst_88 = arith.constant dense<0.000000e+00> : vector<2x8x32xf32>
    %216 = tpu.matmul %215, %202, %cst_88 {dimension_numbers = #tpu.dot_dimension_numbers<[2], [1], [1], [2], [0, 0, 0, 1, 1, 2], [0], [0]>} : vector<2x8x8xf32>, vector<2x8x32xf32>, vector<2x8x32xf32> -> vector<2x8x32xf32>
    "tpu.trace_stop"() : () -> ()
    %217 = vector.shape_cast %216 : vector<2x8x32xf32> to vector<16x32xf32>
    %c0_89 = arith.constant 0 : index
    %c32_90 = arith.constant 32 : index
    %218 = vector.load %arg13[%c0_89, %c32_90] : memref<16x128xf32, #tpu.memory_space<vmem>>, vector<16x32xf32>
    tpu.vector_store %arg13[%c0_89, %c32_90], %217 {strides = array<i32>} : memref<16x128xf32, #tpu.memory_space<vmem>>, vector<16x32xf32>,
    %219 = vector.extract_strided_slice %174 {offsets = [0, 64], sizes = [16, 32], strides = [1, 1]} : vector<16x384xf32> to vector<16x32xf32>
    %220 = vector.shape_cast %219 : vector<16x32xf32> to vector<2x8x32xf32>
    %221 = vector.extract_strided_slice %174 {offsets = [0, 192], sizes = [16, 32], strides = [1, 1]} : vector<16x384xf32> to vector<16x32xf32>
    %222 = vector.shape_cast %221 : vector<16x32xf32> to vector<2x8x32xf32>
    %223 = vector.extract_strided_slice %174 {offsets = [0, 320], sizes = [16, 32], strides = [1, 1]} : vector<16x384xf32> to vector<16x32xf32>
    %224 = vector.shape_cast %223 : vector<16x32xf32> to vector<2x8x32xf32>
    "tpu.trace_start"() <{level = 10 : i32, message = "bqd,bkd->bqk"}> : () -> ()
    %cst_91 = arith.constant dense<0.000000e+00> : vector<2x8x8xf32>
    %225 = tpu.matmul %220, %222, %cst_91 {dimension_numbers = #tpu.dot_dimension_numbers<[2], [2], [1], [1], [0, 0, 0, 1, 1, 1], [0], [0]>} : vector<2x8x32xf32>, vector<2x8x32xf32>, vector<2x8x8xf32> -> vector<2x8x8xf32>
    %cst_92 = arith.constant -1.000000e+09 : f32
    "tpu.trace_stop"() : () -> ()
    %226 = vector.broadcast %cst_92 : f32 to vector<2x8x8xf32>
    %227 = arith.select %3, %226, %225 : vector<2x8x8xi1>, vector<2x8x8xf32>
    %cst_93 = arith.constant dense<0xFF800000> : vector<2x8xf32>
    %228 = vector.multi_reduction <maximumf>, %227, %cst_93 [2] : vector<2x8x8xf32> to vector<2x8xf32>
    %229 = vector.shape_cast %228 : vector<2x8xf32> to vector<2x8x1xf32>
    %230 = vector.broadcast %229 : vector<2x8x1xf32> to vector<2x8x8xf32>
    %231 = arith.subf %227, %230 : vector<2x8x8xf32>
    %232 = math.exp %231 : vector<2x8x8xf32>
    %cst_94 = arith.constant dense<0.000000e+00> : vector<2x8xf32>
    %233 = vector.multi_reduction <add>, %232, %cst_94 [2] : vector<2x8x8xf32> to vector<2x8xf32>
    %234 = vector.shape_cast %233 : vector<2x8xf32> to vector<2x8x1xf32>
    %235 = tpu.reciprocal %234 {approx = true} : vector<2x8x1xf32> -> vector<2x8x1xf32>
    %236 = vector.broadcast %235 : vector<2x8x1xf32> to vector<2x8x8xf32>
    %237 = arith.mulf %232, %236 : vector<2x8x8xf32>
    "tpu.trace_start"() <{level = 10 : i32, message = "bqk,bkd->bqd"}> : () -> ()
    %cst_95 = arith.constant dense<0.000000e+00> : vector<2x8x32xf32>
    %238 = tpu.matmul %237, %224, %cst_95 {dimension_numbers = #tpu.dot_dimension_numbers<[2], [1], [1], [2], [0, 0, 0, 1, 1, 2], [0], [0]>} : vector<2x8x8xf32>, vector<2x8x32xf32>, vector<2x8x32xf32> -> vector<2x8x32xf32>
    "tpu.trace_stop"() : () -> ()
    %239 = vector.shape_cast %238 : vector<2x8x32xf32> to vector<16x32xf32>
    %c0_96 = arith.constant 0 : index
    %c64_97 = arith.constant 64 : index
    %240 = vector.load %arg13[%c0_96, %c64_97] : memref<16x128xf32, #tpu.memory_space<vmem>>, vector<16x32xf32>
    tpu.vector_store %arg13[%c0_96, %c64_97], %239 {strides = array<i32>} : memref<16x128xf32, #tpu.memory_space<vmem>>, vector<16x32xf32>,
    %241 = vector.extract_strided_slice %174 {offsets = [0, 96], sizes = [16, 32], strides = [1, 1]} : vector<16x384xf32> to vector<16x32xf32>
    %242 = vector.shape_cast %241 : vector<16x32xf32> to vector<2x8x32xf32>
    %243 = vector.extract_strided_slice %174 {offsets = [0, 224], sizes = [16, 32], strides = [1, 1]} : vector<16x384xf32> to vector<16x32xf32>
    %244 = vector.shape_cast %243 : vector<16x32xf32> to vector<2x8x32xf32>
    %245 = vector.extract_strided_slice %174 {offsets = [0, 352], sizes = [16, 32], strides = [1, 1]} : vector<16x384xf32> to vector<16x32xf32>
    %246 = vector.shape_cast %245 : vector<16x32xf32> to vector<2x8x32xf32>
    "tpu.trace_start"() <{level = 10 : i32, message = "bqd,bkd->bqk"}> : () -> ()
    %cst_98 = arith.constant dense<0.000000e+00> : vector<2x8x8xf32>
    %247 = tpu.matmul %242, %244, %cst_98 {dimension_numbers = #tpu.dot_dimension_numbers<[2], [2], [1], [1], [0, 0, 0, 1, 1, 1], [0], [0]>} : vector<2x8x32xf32>, vector<2x8x32xf32>, vector<2x8x8xf32> -> vector<2x8x8xf32>
    %cst_99 = arith.constant -1.000000e+09 : f32
    "tpu.trace_stop"() : () -> ()
    %248 = vector.broadcast %cst_99 : f32 to vector<2x8x8xf32>
    %249 = arith.select %3, %248, %247 : vector<2x8x8xi1>, vector<2x8x8xf32>
    %cst_100 = arith.constant dense<0xFF800000> : vector<2x8xf32>
    %250 = vector.multi_reduction <maximumf>, %249, %cst_100 [2] : vector<2x8x8xf32> to vector<2x8xf32>
    %251 = vector.shape_cast %250 : vector<2x8xf32> to vector<2x8x1xf32>
    %252 = vector.broadcast %251 : vector<2x8x1xf32> to vector<2x8x8xf32>
    %253 = arith.subf %249, %252 : vector<2x8x8xf32>
    %254 = math.exp %253 : vector<2x8x8xf32>
    %cst_101 = arith.constant dense<0.000000e+00> : vector<2x8xf32>
    %255 = vector.multi_reduction <add>, %254, %cst_101 [2] : vector<2x8x8xf32> to vector<2x8xf32>
    %256 = vector.shape_cast %255 : vector<2x8xf32> to vector<2x8x1xf32>
    %257 = tpu.reciprocal %256 {approx = true} : vector<2x8x1xf32> -> vector<2x8x1xf32>
    %258 = vector.broadcast %257 : vector<2x8x1xf32> to vector<2x8x8xf32>
    %259 = arith.mulf %254, %258 : vector<2x8x8xf32>
    "tpu.trace_start"() <{level = 10 : i32, message = "bqk,bkd->bqd"}> : () -> ()
    %cst_102 = arith.constant dense<0.000000e+00> : vector<2x8x32xf32>
    %260 = tpu.matmul %259, %246, %cst_102 {dimension_numbers = #tpu.dot_dimension_numbers<[2], [1], [1], [2], [0, 0, 0, 1, 1, 2], [0], [0]>} : vector<2x8x8xf32>, vector<2x8x32xf32>, vector<2x8x32xf32> -> vector<2x8x32xf32>
    "tpu.trace_stop"() : () -> ()
    %261 = vector.shape_cast %260 : vector<2x8x32xf32> to vector<16x32xf32>
    %c0_103 = arith.constant 0 : index
    %c96_104 = arith.constant 96 : index
    %262 = vector.load %arg13[%c0_103, %c96_104] : memref<16x128xf32, #tpu.memory_space<vmem>>, vector<16x32xf32>
    tpu.vector_store %arg13[%c0_103, %c96_104], %261 {strides = array<i32>} : memref<16x128xf32, #tpu.memory_space<vmem>>, vector<16x32xf32>,
    %263 = vector.shape_cast %193 : vector<2x8x8xf32> to vector<1x2x8x8xf32>
    %264 = vector.shape_cast %215 : vector<2x8x8xf32> to vector<1x2x8x8xf32>
    %265 = vector.shape_cast %237 : vector<2x8x8xf32> to vector<1x2x8x8xf32>
    %266 = vector.shape_cast %259 : vector<2x8x8xf32> to vector<1x2x8x8xf32>
    %267 = tpu.concatenate %263, %264, %265, %266 in 0 : vector<1x2x8x8xf32>, vector<1x2x8x8xf32>, vector<1x2x8x8xf32>, vector<1x2x8x8xf32> -> vector<4x2x8x8xf32>
    %c4 = arith.constant 4 : index
    %c0_105 = arith.constant 0 : index
    %c0_106 = arith.constant 0 : index
    %c0_107 = arith.constant 0 : index
    %268 = vector.load %arg12[%c4, %c0_105, %c0_106, %c0_107] : memref<8x2x8x8xf32, #tpu.memory_space<vmem>>, vector<4x2x8x8xf32>
    tpu.vector_store %arg12[%c4, %c0_105, %c0_106, %c0_107], %267 {strides = array<i32>} : memref<8x2x8x8xf32, #tpu.memory_space<vmem>>, vector<4x2x8x8xf32>,
    %c0_108 = arith.constant 0 : index
    %c0_109 = arith.constant 0 : index
    %269 = vector.load %arg13[%c0_108, %c0_109] : memref<16x128xf32, #tpu.memory_space<vmem>>, vector<16x128xf32>
    %270 = arith.truncf %269 : vector<16x128xf32> to vector<16x128xbf16>
    %c1_110 = arith.constant 1 : index
    %c0_111 = arith.constant 0 : index
    %c0_112 = arith.constant 0 : index
    %271 = vector.load %arg4[%c1_110, %c0_111, %c0_112] : memref<2x128x128xbf16, #tpu.memory_space<vmem>>, vector<1x128x128xbf16>
    %272 = vector.shape_cast %271 : vector<1x128x128xbf16> to vector<128x128xbf16>
    %cst_113 = arith.constant dense<0.000000e+00> : vector<16x128xf32>
    %273 = tpu.matmul %270, %272, %cst_113 {dimension_numbers = #tpu.dot_dimension_numbers<[1], [0], [0], [1], [0, 0, 1, 1], [], []>} : vector<16x128xbf16>, vector<128x128xbf16>, vector<16x128xf32> -> vector<16x128xf32>
    %274 = arith.addf %273, %170 : vector<16x128xf32>
    %c1_114 = arith.constant 1 : index
    %c0_115 = arith.constant 0 : index
    %c0_116 = arith.constant 0 : index
    %275 = vector.load %arg5[%c1_114, %c0_115, %c0_116] : memref<2x1x128xf32, #tpu.memory_space<vmem>>, vector<1x1x128xf32>
    %276 = vector.shape_cast %275 : vector<1x1x128xf32> to vector<1x128xf32>
    %c1_117 = arith.constant 1 : index
    %c0_118 = arith.constant 0 : index
    %c0_119 = arith.constant 0 : index
    %277 = vector.load %arg6[%c1_117, %c0_118, %c0_119] : memref<2x1x128xf32, #tpu.memory_space<vmem>>, vector<1x1x128xf32>
    %278 = vector.shape_cast %277 : vector<1x1x128xf32> to vector<1x128xf32>
    %cst_120 = arith.constant dense<0.000000e+00> : vector<16xf32>
    %279 = vector.multi_reduction <add>, %274, %cst_120 [1] : vector<16x128xf32> to vector<16xf32>
    %280 = vector.shape_cast %279 : vector<16xf32> to vector<16x1xf32>
    %cst_121 = arith.constant 1.280000e+02 : f32
    %281 = vector.broadcast %cst_121 : f32 to vector<16x1xf32>
    %282 = arith.divf %280, %281 : vector<16x1xf32>
    %283 = vector.broadcast %282 : vector<16x1xf32> to vector<16x128xf32>
    %284 = arith.subf %274, %283 : vector<16x128xf32>
    %285 = arith.mulf %284, %284 : vector<16x128xf32>
    %cst_122 = arith.constant dense<0.000000e+00> : vector<16xf32>
    %286 = vector.multi_reduction <add>, %285, %cst_122 [1] : vector<16x128xf32> to vector<16xf32>
    %287 = vector.shape_cast %286 : vector<16xf32> to vector<16x1xf32>
    %cst_123 = arith.constant 1.280000e+02 : f32
    %288 = vector.broadcast %cst_123 : f32 to vector<16x1xf32>
    %289 = arith.divf %287, %288 : vector<16x1xf32>
    %290 = vector.broadcast %282 : vector<16x1xf32> to vector<16x128xf32>
    %291 = arith.subf %274, %290 : vector<16x128xf32>
    %cst_124 = arith.constant 9.99999974E-6 : f32
    %292 = vector.broadcast %cst_124 : f32 to vector<16x1xf32>
    %293 = arith.addf %289, %292 : vector<16x1xf32>
    %294 = math.rsqrt %293 : vector<16x1xf32>
    %295 = vector.broadcast %294 : vector<16x1xf32> to vector<16x128xf32>
    %296 = arith.mulf %291, %295 : vector<16x128xf32>
    %297 = vector.broadcast %276 : vector<1x128xf32> to vector<16x128xf32>
    %298 = arith.mulf %296, %297 : vector<16x128xf32>
    %299 = vector.broadcast %278 : vector<1x128xf32> to vector<16x128xf32>
    %300 = arith.addf %298, %299 : vector<16x128xf32>
    %301 = arith.truncf %300 : vector<16x128xf32> to vector<16x128xbf16>
    %c1_125 = arith.constant 1 : index
    %c0_126 = arith.constant 0 : index
    %c0_127 = arith.constant 0 : index
    %302 = vector.load %arg7[%c1_125, %c0_126, %c0_127] : memref<2x128x256xbf16, #tpu.memory_space<vmem>>, vector<1x128x256xbf16>
    %303 = vector.shape_cast %302 : vector<1x128x256xbf16> to vector<128x256xbf16>
    %cst_128 = arith.constant dense<0.000000e+00> : vector<16x256xf32>
    %304 = tpu.matmul %301, %303, %cst_128 {dimension_numbers = #tpu.dot_dimension_numbers<[1], [0], [0], [1], [0, 0, 1, 1], [], []>} : vector<16x128xbf16>, vector<128x256xbf16>, vector<16x256xf32> -> vector<16x256xf32>
    %cst_129 = arith.constant 0.000000e+00 : f32
    %305 = vector.broadcast %cst_129 : f32 to vector<16x256xf32>
    %306 = arith.maximumf %304, %305 : vector<16x256xf32>
    %307 = arith.truncf %306 : vector<16x256xf32> to vector<16x256xbf16>
    %c1_130 = arith.constant 1 : index
    %c0_131 = arith.constant 0 : index
    %c0_132 = arith.constant 0 : index
    %308 = vector.load %arg8[%c1_130, %c0_131, %c0_132] : memref<2x256x128xbf16, #tpu.memory_space<vmem>>, vector<1x256x128xbf16>
    %309 = vector.shape_cast %308 : vector<1x256x128xbf16> to vector<256x128xbf16>
    %cst_133 = arith.constant dense<0.000000e+00> : vector<16x128xf32>
    %310 = tpu.matmul %307, %309, %cst_133 {dimension_numbers = #tpu.dot_dimension_numbers<[1], [0], [0], [1], [0, 0, 1, 1], [], []>} : vector<16x256xbf16>, vector<256x128xbf16>, vector<16x128xf32> -> vector<16x128xf32>
    %311 = arith.addf %310, %300 : vector<16x128xf32>
    %c1_134 = arith.constant 1 : index
    %c0_135 = arith.constant 0 : index
    %c0_136 = arith.constant 0 : index
    %312 = vector.load %arg9[%c1_134, %c0_135, %c0_136] : memref<2x1x128xf32, #tpu.memory_space<vmem>>, vector<1x1x128xf32>
    %313 = vector.shape_cast %312 : vector<1x1x128xf32> to vector<1x128xf32>
    %c1_137 = arith.constant 1 : index
    %c0_138 = arith.constant 0 : index
    %c0_139 = arith.constant 0 : index
    %314 = vector.load %arg10[%c1_137, %c0_138, %c0_139] : memref<2x1x128xf32, #tpu.memory_space<vmem>>, vector<1x1x128xf32>
    %315 = vector.shape_cast %314 : vector<1x1x128xf32> to vector<1x128xf32>
    %cst_140 = arith.constant dense<0.000000e+00> : vector<16xf32>
    %316 = vector.multi_reduction <add>, %311, %cst_140 [1] : vector<16x128xf32> to vector<16xf32>
    %317 = vector.shape_cast %316 : vector<16xf32> to vector<16x1xf32>
    %cst_141 = arith.constant 1.280000e+02 : f32
    %318 = vector.broadcast %cst_141 : f32 to vector<16x1xf32>
    %319 = arith.divf %317, %318 : vector<16x1xf32>
    %320 = vector.broadcast %319 : vector<16x1xf32> to vector<16x128xf32>
    %321 = arith.subf %311, %320 : vector<16x128xf32>
    %322 = arith.mulf %321, %321 : vector<16x128xf32>
    %cst_142 = arith.constant dense<0.000000e+00> : vector<16xf32>
    %323 = vector.multi_reduction <add>, %322, %cst_142 [1] : vector<16x128xf32> to vector<16xf32>
    %324 = vector.shape_cast %323 : vector<16xf32> to vector<16x1xf32>
    %cst_143 = arith.constant 1.280000e+02 : f32
    %325 = vector.broadcast %cst_143 : f32 to vector<16x1xf32>
    %326 = arith.divf %324, %325 : vector<16x1xf32>
    %327 = vector.broadcast %319 : vector<16x1xf32> to vector<16x128xf32>
    %328 = arith.subf %311, %327 : vector<16x128xf32>
    %cst_144 = arith.constant 9.99999974E-6 : f32
    %329 = vector.broadcast %cst_144 : f32 to vector<16x1xf32>
    %330 = arith.addf %326, %329 : vector<16x1xf32>
    %331 = math.rsqrt %330 : vector<16x1xf32>
    %332 = vector.broadcast %331 : vector<16x1xf32> to vector<16x128xf32>
    %333 = arith.mulf %328, %332 : vector<16x128xf32>
    %334 = vector.broadcast %313 : vector<1x128xf32> to vector<16x128xf32>
    %335 = arith.mulf %333, %334 : vector<16x128xf32>
    %336 = vector.broadcast %315 : vector<1x128xf32> to vector<16x128xf32>
    %337 = arith.addf %335, %336 : vector<16x128xf32>
    %c0_145 = arith.constant 0 : index
    %c0_146 = arith.constant 0 : index
    %338 = vector.load %arg11[%c0_145, %c0_146] : memref<16x128xf32, #tpu.memory_space<vmem>>, vector<16x128xf32>
    tpu.vector_store %arg11[%c0_145, %c0_146], %337 {strides = array<i32>} : memref<16x128xf32, #tpu.memory_space<vmem>>, vector<16x128xf32>,
    return
  }
  func.func @transform_0(%arg0: i32) -> (i32, i32) {
    %c0_i32 = arith.constant 0 : i32
    %c0_i32_0 = arith.constant 0 : i32
    %c0_i32_1 = arith.constant 0 : i32
    return %c0_i32, %c0_i32_0 : i32, i32
  }
  func.func @transform_1(%arg0: i32) -> (i32, i32, i32) {
    %c0_i32 = arith.constant 0 : i32
    %c0_i32_0 = arith.constant 0 : i32
    %c0_i32_1 = arith.constant 0 : i32
    %c0_i32_2 = arith.constant 0 : i32
    return %c0_i32, %c0_i32_0, %c0_i32_1 : i32, i32, i32
  }
  func.func @transform_2(%arg0: i32) -> (i32, i32, i32) {
    %c0_i32 = arith.constant 0 : i32
    %c0_i32_0 = arith.constant 0 : i32
    %c0_i32_1 = arith.constant 0 : i32
    %c0_i32_2 = arith.constant 0 : i32
    return %c0_i32, %c0_i32_0, %c0_i32_1 : i32, i32, i32
  }
  func.func @transform_3(%arg0: i32) -> (i32, i32, i32) {
    %c0_i32 = arith.constant 0 : i32
    %c0_i32_0 = arith.constant 0 : i32
    %c0_i32_1 = arith.constant 0 : i32
    %c0_i32_2 = arith.constant 0 : i32
    return %c0_i32, %c0_i32_0, %c0_i32_1 : i32, i32, i32
  }
  func.func @transform_4(%arg0: i32) -> (i32, i32, i32) {
    %c0_i32 = arith.constant 0 : i32
    %c0_i32_0 = arith.constant 0 : i32
    %c0_i32_1 = arith.constant 0 : i32
    %c0_i32_2 = arith.constant 0 : i32
    return %c0_i32, %c0_i32_0, %c0_i32_1 : i32, i32, i32
  }
  func.func @transform_5(%arg0: i32) -> (i32, i32, i32) {
    %c0_i32 = arith.constant 0 : i32
    %c0_i32_0 = arith.constant 0 : i32
    %c0_i32_1 = arith.constant 0 : i32
    %c0_i32_2 = arith.constant 0 : i32
    return %c0_i32, %c0_i32_0, %c0_i32_1 : i32, i32, i32
  }
  func.func @transform_6(%arg0: i32) -> (i32, i32, i32) {
    %c0_i32 = arith.constant 0 : i32
    %c0_i32_0 = arith.constant 0 : i32
    %c0_i32_1 = arith.constant 0 : i32
    %c0_i32_2 = arith.constant 0 : i32
    return %c0_i32, %c0_i32_0, %c0_i32_1 : i32, i32, i32
  }
  func.func @transform_7(%arg0: i32) -> (i32, i32, i32) {
    %c0_i32 = arith.constant 0 : i32
    %c0_i32_0 = arith.constant 0 : i32
    %c0_i32_1 = arith.constant 0 : i32
    %c0_i32_2 = arith.constant 0 : i32
    return %c0_i32, %c0_i32_0, %c0_i32_1 : i32, i32, i32
  }
  func.func @transform_8(%arg0: i32) -> (i32, i32, i32) {
    %c0_i32 = arith.constant 0 : i32
    %c0_i32_0 = arith.constant 0 : i32
    %c0_i32_1 = arith.constant 0 : i32
    %c0_i32_2 = arith.constant 0 : i32
    return %c0_i32, %c0_i32_0, %c0_i32_1 : i32, i32, i32
  }
  func.func @transform_9(%arg0: i32) -> (i32, i32, i32) {
    %c0_i32 = arith.constant 0 : i32
    %c0_i32_0 = arith.constant 0 : i32
    %c0_i32_1 = arith.constant 0 : i32
    %c0_i32_2 = arith.constant 0 : i32
    return %c0_i32, %c0_i32_0, %c0_i32_1 : i32, i32, i32
  }
  func.func @transform_10(%arg0: i32) -> (i32, i32) {
    %c0_i32 = arith.constant 0 : i32
    %c0_i32_0 = arith.constant 0 : i32
    %c0_i32_1 = arith.constant 0 : i32
    return %c0_i32, %c0_i32_0 : i32, i32
  }
  func.func @transform_11(%arg0: i32) -> (i32, i32, i32, i32) {
    %c0_i32 = arith.constant 0 : i32
    %c0_i32_0 = arith.constant 0 : i32
    %c0_i32_1 = arith.constant 0 : i32
    %c0_i32_2 = arith.constant 0 : i32
    %c0_i32_3 = arith.constant 0 : i32
    return %c0_i32, %c0_i32_0, %c0_i32_1, %c0_i32_2 : i32, i32, i32, i32
  }
}

</mosaic_0001>

<bundles_post_ra>
// kernel: tpu_custom_call.1
= control target key start
LH: loop header
LB: loop body
LE: loop exit
PB: predicated region body
PF: predicated region fallthrough
CT: control target
= control target key end

     0   :  { %17 = vsyncpa [#allocation4], 0  ;;  %s6115_s0 = inlined_call_operand.hbm [shape: f32[16,128], index: 0, kind: input, shape index: {}]   ;;  %s6116_s1 = inlined_call_operand.hbm [shape: f32[2,8,8], index: 1, kind: input, shape index: {}]   ;;  %s6117_s2 = inlined_call_operand.hbm [shape: bf16[2,128,384], index: 2, kind: input, shape index: {}]   ;;  %s6118_s3 = inlined_call_operand.hbm [shape: bf16[2,128,128], index: 3, kind: input, shape index: {}]   ;;  %s6119_s4 = inlined_call_operand.vmem [shape: f32[2,1,128], index: 4, kind: input, shape index: {}]   ;;  %s6120_s5 = inlined_call_operand.vmem [shape: f32[2,1,128], index: 5, kind: input, shape index: {}]   ;;  %s6121_s6 = inlined_call_operand.hbm [shape: bf16[2,128,256], index: 6, kind: input, shape index: {}]   ;;  %s6122_s7 = inlined_call_operand.hbm [shape: bf16[2,256,128], index: 7, kind: input, shape index: {}]   ;;  %s6123_s8 = inlined_call_operand.vmem [shape: f32[2,1,128], index: 8, kind: input, shape index: {}]   ;;  %s6124_s9 = inlined_call_operand.vmem [shape: f32[2,1,128], index: 9, kind: input, shape index: {}]   ;;  %s6125_s10 = inlined_call_operand.hbm [shape: f32[16,128], index: 10, kind: output, shape index: {0}]   ;;  %s6126_s11 = inlined_call_operand.hbm [shape: f32[8,2,8,8], index: 11, kind: output, shape index: {1}]  }
   0x1   :  { %18 = vsyncpa [#allocation7], 0 }
   0x2   :  { %19 = vsyncpa [#allocation10], 0 }
   0x3   :  { %20 = vsyncpa [#allocation13], 0 }
   0x4   :  { %21 = vsyncpa [#allocation5], 0 }
   0x5   :  { %22 = vsyncpa [#allocation16], 0  ;;  %s5416_s17 = smov [#allocation6]   ;;  %s5417_s19 = smov [#allocation9]  }
   0x6   :  { %s40_s18 = sshll.u32 %s5416_s17, 4  ;;  %s64_s20 = sshll.u32 %s5417_s19, 4  ;;  %s41_s18 = int_to_ptr.vmem [resolvable:$true] %s40_s18  ;;  %s5495_s20 = int_to_ptr.vmem [resolvable:$true] %s64_s20 }
   0x7   :  { %s5228_s23 = scalar_lea.hbm %s6116_s1, 256 }
   0x8   :  { %p5229_p0 = scmp.ne.s32.totalorder %s6116_s1, %s5228_s23  ;;  %p5232_p1 = scmp.lt.u32.totalorder %s5228_s23, %s6116_s1 }
   0xa   :  { %p5234_p2 = pnand %p5232_p1, %p5229_p0 }
   0xc   :  { %5237 = shalt.err (!%p5234_p2)
}
   0xd   :  { %s5238_s28 = scalar_lea.vmem %s41_s18, 256  ;;  %p5243_p4 = scmp.lt.s32.totalorder %s41_s18, %s41_s18 }
   0xe   :  { %p5239_p3 = scmp.ne.s32.totalorder %s41_s18, %s5238_s28  ;;  %p5244_p5 = scmp.lt.s32.totalorder %s5238_s28, %s5238_s28 }
  0x10   :  { %p5245_p6 = por %p5244_p5, %p5243_p4 }
  0x12   :  { %p5246_p7 = pnand %p5245_p6, %p5239_p3 }
  0x14   :  { %5249 = shalt.err (!%p5246_p7)
}
  0x15   :  { %s5418_s29 = smov 128   ;;  %s5419_s30 = smov 8  }
  0x16   :  { %46 = dma.hbm_to_vmem [thread:$0]  %s6116_s1, 256, %s41_s18, [#allocation7], %s5418_s29, %s5418_s29, %s5419_s30  }
  0x17   :  { %s5250_s16 = scalar_lea.hbm %s6118_s3, 2048 }
  0x18   :  { %p5251_p8 = scmp.ne.s32.totalorder %s6118_s3, %s5250_s16  ;;  %p5254_p9 = scmp.lt.u32.totalorder %s5250_s16, %s6118_s3 }
  0x1a   :  { %p5256_p10 = pnand %p5254_p9, %p5251_p8 }
  0x1c   :  { %5259 = shalt.err (!%p5256_p10)
}
  0x1d   :  { %s5260_s23 = scalar_lea.vmem %s5495_s20, 2048  ;;  %p5265_p12 = scmp.lt.s32.totalorder %s5495_s20, %s5495_s20 }
  0x1e   :  { %p5261_p11 = scmp.ne.s32.totalorder %s5495_s20, %s5260_s23  ;;  %p5266_p13 = scmp.lt.s32.totalorder %s5260_s23, %s5260_s23 }
  0x20   :  { %p5267_p0 = por %p5266_p13, %p5265_p12 }
  0x22   :  { %p5268_p1 = pnand %p5267_p0, %p5261_p11 }
  0x24   :  { %5271 = shalt.err (!%p5268_p1)
}
  0x25   :  { %s5420_s1 = smov 64   ;;  %s5421_s18 = smov 4  }
  0x26   :  { %70 = dma.hbm_to_vmem [thread:$0]  %s6118_s3, 2048, %s5495_s20, [#allocation10], %s5420_s1, %s5420_s1, %s5421_s18  }
  0x27   :  { %s5422_s26 = smov [#allocation3]   ;;  %s5423_s28 = smov [#allocation8]  }
  0x28   :  { %s28_s27 = sshll.u32 %s5422_s26, 4  ;;  %s52_s12 = sshll.u32 %s5423_s28, 4  ;;  %s29_s27 = int_to_ptr.vmem [resolvable:$true] %s28_s27  ;;  %s5532_s12 = int_to_ptr.vmem [resolvable:$true] %s52_s12 }
  0x29   :  { %s5272_s15 = scalar_lea.hbm %s6115_s0, 256 }
  0x2a   :  { %p5273_p2 = scmp.ne.s32.totalorder %s6115_s0, %s5272_s15  ;;  %p5276_p3 = scmp.lt.u32.totalorder %s5272_s15, %s6115_s0 }
  0x2c   :  { %p5278_p4 = pnand %p5276_p3, %p5273_p2 }
  0x2e   :  { %5281 = shalt.err (!%p5278_p4)
}
  0x2f   :  { %s5282_s3 = scalar_lea.vmem %s29_s27, 256  ;;  %p5287_p6 = scmp.lt.s32.totalorder %s29_s27, %s29_s27 }
  0x30   :  { %p5283_p5 = scmp.ne.s32.totalorder %s29_s27, %s5282_s3  ;;  %p5288_p7 = scmp.lt.s32.totalorder %s5282_s3, %s5282_s3 }
  0x32   :  { %p5289_p8 = por %p5288_p7, %p5287_p6 }
  0x34   :  { %p5290_p9 = pnand %p5289_p8, %p5283_p5 }
  0x36   :  { %5293 = shalt.err (!%p5290_p9)
}
  0x37   :  { %34 = dma.hbm_to_vmem [thread:$0]  %s6115_s0, 256, %s29_s27, [#allocation4], %s5418_s29, %s5418_s29, %s5419_s30  }
  0x38   :  { %s5294_s25 = scalar_lea.hbm %s6117_s2, 6144 }
  0x39   :  { %p5295_p10 = scmp.ne.s32.totalorder %s6117_s2, %s5294_s25  ;;  %p5298_p11 = scmp.lt.u32.totalorder %s5294_s25, %s6117_s2 }
  0x3b   :  { %p5300_p12 = pnand %p5298_p11, %p5295_p10 }
  0x3d   :  { %5303 = shalt.err (!%p5300_p12)
}
  0x3e   :  { %s5304_s15 = scalar_lea.vmem %s5532_s12, 6144  ;;  %p5309_p0 = scmp.lt.s32.totalorder %s5532_s12, %s5532_s12 }
  0x3f   :  { %p5305_p13 = scmp.ne.s32.totalorder %s5532_s12, %s5304_s15  ;;  %p5310_p1 = scmp.lt.s32.totalorder %s5304_s15, %s5304_s15 }
  0x41   :  { %p5311_p2 = por %p5310_p1, %p5309_p0 }
  0x43   :  { %p5312_p3 = pnand %p5311_p2, %p5305_p13 }
  0x45   :  { %5315 = shalt.err (!%p5312_p3)
}
  0x46   :  { %s5424_s0 = smov 192   ;;  %s5425_s27 = smov 12  }
  0x47   :  { %58 = dma.hbm_to_vmem [thread:$0]  %s6117_s2, 6144, %s5532_s12, [#allocation7], %s5424_s0, %s5424_s0, %s5425_s27  }
  0x48   :  { %s5426_s19 = smov [#allocation11]   ;;  %s5427_s3 = smov [#allocation12]  }
  0x49   :  { %s80_s21 = sshll.u32 %s5426_s19, 4  ;;  %s92_s20 = sshll.u32 %s5427_s3, 4  ;;  %s81_s21 = int_to_ptr.vmem [resolvable:$true] %s80_s21  ;;  %s5566_s20 = int_to_ptr.vmem [resolvable:$true] %s92_s20 }
  0x4a   :  { %s5316_s24 = scalar_lea.hbm %s6121_s6, 4096 }
  0x4b   :  { %p5317_p4 = scmp.ne.s32.totalorder %s6121_s6, %s5316_s24  ;;  %p5320_p5 = scmp.lt.u32.totalorder %s5316_s24, %s6121_s6 }
  0x4d   :  { %p5322_p6 = pnand %p5320_p5, %p5317_p4 }
  0x4f   :  { %5325 = shalt.err (!%p5322_p6)
}
  0x50   :  { %s5326_s2 = scalar_lea.vmem %s81_s21, 4096  ;;  %p5331_p8 = scmp.lt.s32.totalorder %s81_s21, %s81_s21 }
  0x51   :  { %p5327_p7 = scmp.ne.s32.totalorder %s81_s21, %s5326_s2  ;;  %p5332_p9 = scmp.lt.s32.totalorder %s5326_s2, %s5326_s2 }
  0x53   :  { %p5333_p10 = por %p5332_p9, %p5331_p8 }
  0x55   :  { %p5334_p11 = pnand %p5333_p10, %p5327_p7 }
  0x57   :  { %5337 = shalt.err (!%p5334_p11)
}
  0x58   :  { %86 = dma.hbm_to_vmem [thread:$0]  %s6121_s6, 4096, %s81_s21, [#allocation10], %s5418_s29, %s5418_s29, %s5419_s30  }
  0x59   :  { %s5338_s27 = scalar_lea.hbm %s6122_s7, 4096 }
  0x5a   :  { %p5339_p12 = scmp.ne.s32.totalorder %s6122_s7, %s5338_s27  ;;  %p5342_p13 = scmp.lt.u32.totalorder %s5338_s27, %s6122_s7 }
  0x5c   :  { %p5344_p0 = pnand %p5342_p13, %p5339_p12 }
  0x5e   :  { %5347 = shalt.err (!%p5344_p0)
}
  0x5f   :  { %s5348_s22 = scalar_lea.vmem %s5566_s20, 4096  ;;  %p5353_p2 = scmp.lt.s32.totalorder %s5566_s20, %s5566_s20 }
  0x60   :  { %p5349_p1 = scmp.ne.s32.totalorder %s5566_s20, %s5348_s22  ;;  %p5354_p3 = scmp.lt.s32.totalorder %s5348_s22, %s5348_s22 }
  0x62   :  { %p5355_p4 = por %p5354_p3, %p5353_p2 }
  0x64   :  { %p5356_p5 = pnand %p5355_p4, %p5349_p1 }
  0x66   :  { %5359 = shalt.err (!%p5356_p5)
}
  0x67   :  { %98 = dma.hbm_to_vmem [thread:$0]  %s6122_s7, 4096, %s5566_s20, [#allocation13], %s5420_s1, %s5420_s1, %s5421_s18  }
  0x68   :  { %5404 = dma.done.wait [#allocation4], 256  }
  0x69   :  { %5405 = vsyncadd [#allocation4], 4294967040 }
  0x6a   :  { %5406 = dma.done.wait [#allocation7], 6400  }
  0x6b   :  { %5407 = vsyncadd [#allocation7], 4294960896 }
  0x6c   :  { %5408 = dma.done.wait [#allocation10], 6144  }
  0x6d   :  { %5409 = vsyncadd [#allocation10], 4294961152 }
  0x6e   :  { %5410 = dma.done.wait [#allocation13], 4096  }
  0x6f   :  { %5411 = vsyncadd [#allocation13], 4294963200  ;;  %v5428_v0 = vmov 0   ;;  %v5429_v1 = vmov 0.0   ;;  %vm5430_vm0 = vmmov 0   ;;  %v5610_v23 = vld [vmem:[#allocation3] sm:$0xff] }
  0x70   :  { %321 = vmatprep.mubr.bf16.mxu0 %v5428_v0  ;;  %4729 = vmatprep.subr.bf16.mxu1 %v5429_v1  ;;  %v4988_v2 = vld [vmem:[#allocation8 + $0x4] ss:$12 sps:$4 sm:$0xff]   ;;  %v4990_v3 = vld [vmem:[#allocation8] ss:$12 sps:$4 sm:$0xff]   ;;  %v4991_v4 = vld [vmem:[#allocation8 + $0x1c] ss:$12 sps:$4 sm:$0xff]  }
  0x71   :  { %4745 = vmatprep.mubr.msk.bf16.mxu1 %vm5430_vm0, %v5429_v1  ;;  %289 = vmatprep.subr.bf16.mxu0 %v4988_v2  ;;  %v4993_v5 = vld [vmem:[#allocation8 + $0x18] ss:$12 sps:$4 sm:$0xff]   ;;  %v4994_v6 = vld [vmem:[#allocation8 + $0x34] ss:$12 sps:$4 sm:$0xff]   ;;  %v4996_v7 = vld [vmem:[#allocation8 + $0x30] ss:$12 sps:$4 sm:$0xff]  }
  0x72   :  { %290 = vmatpush1.bf16.msra.mxu0 %v4990_v3  ;;  %v4997_v8 = vld [vmem:[#allocation8 + $0x4c] ss:$12 sps:$4 sm:$0xff]   ;;  %v4999_v9 = vld [vmem:[#allocation8 + $0x48] ss:$12 sps:$4 sm:$0xff]   ;;  %v5000_v10 = vld [vmem:[#allocation8 + $0x64] ss:$12 sps:$4 sm:$0xff]  }
  0x73   :  { %291 = vmatprep.subr.bf16.mxu0 %v4991_v4  ;;  %v5012_v11 = vld [vmem:[#allocation8 + $0x8] ss:$12 sps:$4 sm:$0xff]   ;;  %v5013_v12 = vld [vmem:[#allocation8 + $0x20] ss:$12 sps:$4 sm:$0xff]   ;;  %v5005_v15 = vld [vmem:[#allocation8 + $0x78] ss:$12 sps:$4 sm:$0xff]  }
  0x74   :  { %4730 = vmatpush3.bf16.msra.mxu1 %v5012_v11  ;;  %v5002_v13 = vld [vmem:[#allocation8 + $0x60] ss:$12 sps:$4 sm:$0xff]   ;;  %v5003_v14 = vld [vmem:[#allocation8 + $0x7c] ss:$12 sps:$4 sm:$0xff]   ;;  %v5014_v16 = vld [vmem:[#allocation8 + $0x38] ss:$12 sps:$4 sm:$0xff]  }
  0x75   :  { %4731 = vmatprep.subr.bf16.mxu1 %v5429_v1  ;;  %v5006_v17 = vld [vmem:[#allocation8 + $0x94] ss:$12 sps:$4 sm:$0xff]   ;;  %v5015_v18 = vld [vmem:[#allocation8 + $0x50] ss:$12 sps:$4 sm:$0xff]   ;;  %v5009_v20 = vld [vmem:[#allocation8 + $0xac] ss:$12 sps:$4 sm:$0xff]  }
  0x76   :  { %292 = vmatpush1.bf16.msra.mxu0 %v4993_v5  ;;  %v5008_v19 = vld [vmem:[#allocation8 + $0x90] ss:$12 sps:$4 sm:$0xff]   ;;  %v5016_v21 = vld [vmem:[#allocation8 + $0x68] ss:$12 sps:$4 sm:$0xff]   ;;  %v5017_v25 = vld [vmem:[#allocation8 + $0x80] ss:$12 sps:$4 sm:$0xff]  }
  0x77   :  { %293 = vmatprep.subr.bf16.mxu0 %v4994_v6  ;;  %v5011_v22 = vld [vmem:[#allocation8 + $0xa8] ss:$12 sps:$4 sm:$0xff]   ;;  %v5018_v27 = vld [vmem:[#allocation8 + $0x98] ss:$12 sps:$4 sm:$0xff]   ;;  %v5019_v28 = vld [vmem:[#allocation8 + $0xb0] ss:$12 sps:$4 sm:$0xff]  }
  0x78   :  { %4732 = vmatpush3.bf16.msra.mxu1 %v5013_v12  ;;  %v5612_v24 = vld [vmem:[#allocation3 + $0x8] sm:$0xff]  ;;  %vm373_vm1 = vcmask 261120   ;;  %s5431_s7 = smov 96   ;;  %v5656_v37 = vld [vmem:[#allocation6] sm:$0xff]  ;;  %vm528_vm3 = vcmask 64512   ;;  %v5659_v38 = vld [vmem:[#allocation6 + $0x8] sm:$0xff] }
  0x79   :  { %4733 = vmatprep.subr.bf16.mxu1 %v5429_v1  ;;  %v128_v26 = vpack.c.bf16 %v5612_v24, %v5610_v23  ;;  %vm126_vm2 = vcmp.gt.f32.partialorder %v5656_v37, 0.0  ;;  %vm127_vm4 = vcmp.gt.f32.partialorder %v5659_v38, 0.0  ;;  %s5432_s18 = smov 32   ;;  %vm1041_vm5 = vcmask 523520  }
  0x7a   :  { %294 = vmatpush1.bf16.msra.mxu0 %v4996_v7  ;;  %vm1384_vm6 = vcmask 785920   ;;  %vm1727_vm7 = vcmask 1048320  }
  0x7b   :  { %295 = vmatprep.subr.bf16.mxu0 %v4997_v8 }
  0x7c   :  { %4734 = vmatpush3.bf16.msra.mxu1 %v5014_v16 }
  0x7d   :  { %4735 = vmatprep.subr.bf16.mxu1 %v5429_v1 }
  0x7e   :  { %296 = vmatpush1.bf16.msra.mxu0 %v4999_v9 }
  0x7f   :  { %297 = vmatprep.subr.bf16.mxu0 %v5000_v10 }
  0x80   :  { %4736 = vmatpush3.bf16.msra.mxu1 %v5015_v18 }
  0x81   :  { %4737 = vmatprep.subr.bf16.mxu1 %v5429_v1 }
  0x82   :  { %298 = vmatpush1.bf16.msra.mxu0 %v5002_v13 }
  0x83   :  { %299 = vmatprep.subr.bf16.mxu0 %v5003_v14 }
  0x84   :  { %4738 = vmatpush3.bf16.msra.mxu1 %v5016_v21 }
  0x85   :  { %4739 = vmatprep.subr.bf16.mxu1 %v5429_v1 }
  0x86   :  { %300 = vmatpush1.bf16.msra.mxu0 %v5005_v15 }
  0x87   :  { %301 = vmatprep.subr.bf16.mxu0 %v5006_v17 }
  0x88   :  { %4740 = vmatpush3.bf16.msra.mxu1 %v5017_v25 }
  0x89   :  { %4741 = vmatprep.subr.bf16.mxu1 %v5429_v1 }
  0x8a   :  { %302 = vmatpush1.bf16.msra.mxu0 %v5008_v19 }
  0x8b   :  { %303 = vmatprep.subr.bf16.mxu0 %v5009_v20 }
  0x8c   :  { %4742 = vmatpush3.bf16.msra.mxu1 %v5018_v27 }
  0x8d   :  { %4743 = vmatprep.subr.bf16.mxu1 %v5429_v1 }
  0x8e   :  { %304 = vmatpush1.bf16.msra.mxu0 %v5011_v22 }
  0x8f   :  { %4789 = vmatprep.subr.mxu0 %v5429_v1 }
  0x90   :  { %4744 = vmatpush3.bf16.msra.mxu1 %v5019_v28 }
  0x91   :  { %322 = vmatmul.mubr.bf16.vlgmr.msra.gmra.mrb[0].mxu0 %v128_v26  ;;  %4749 = vmatprep.subr.mxu1 %v5429_v1 }
  0x92   :  { %4791 = vmatprep.mubr.msk.f32.mxu0 %vm5430_vm0, %v5429_v1 }
  0x93   :  { %4746 = vmatmul.mubr.bf16.vlgmr.msra.gmra.mrb[0].mxu1 %v128_v26 }
  0x94   :  { %4751 = vmatprep.mubr.msk.f32.mxu1 %vm5430_vm0, %v5429_v1 }
 0x164   :  { %v5626_v29 = vpop.f32.mrb[0].mxu0 }
 0x165   :  { %699 = vrot.lane.b32.xlu1 %v5626_v29, %s5431_s7  ;;  %v5630_v30 = vpop.f32.mrb[1].mxu0 }
 0x166   :  { %v5632_v31 = vpop.f32.mrb[2].mxu0  ;;  %4750 = vmatpush3.xpose.msk.msra.mxu1 %vm373_vm1, %v5630_v30  ;;  %v5650_v33 = vpop.f32.mrb[0].mxu1 }
 0x167   :  { %v5636_v32 = vpop.f32.mrb[3].mxu0  ;;  %4754 = vmatprep.subr.mxu1 %v5429_v1  ;;  %v4747_v34 = vpop.f32.mrb[1].mxu1 }
 0x168   :  { %v5653_v35 = vpop.f32.mrb[2].mxu1 }
 0x169   :  { %4752 = vmatmul.mubr.msk.f32.vlgmr.msra.gmra.mrb[4].mxu1 %vm373_vm1, %v5626_v29  ;;  %v4748_v36 = vpop.f32.mrb[3].mxu1 }
 0x16a   :  { %4755 = vmatpush3.xpose.msk.msra.mxu1 %vm373_vm1, %v5636_v32  ;;  %4756 = vmatprep.mubr.msk.f32.mxu1 %vm5430_vm0, %v5429_v1 }
 0x16b   :  { %4759 = vmatprep.subr.mxu1 %v5429_v1 }
 0x16d   :  { %4757 = vmatmul.mubr.msk.f32.vlgmr.msra.gmra.mrb[6].mxu1 %vm373_vm1, %v5632_v31 }
 0x16e   :  { %4761 = vmatprep.mubr.msk.f32.mxu1 %vm5430_vm0, %v5429_v1  ;;  %4760 = vmatpush3.msra.mxu1 %v5650_v33 }
 0x16f   :  { %4764 = vmatprep.subr.mxu1 %v5429_v1 }
 0x1d7   :  { %v700_v57 = vpop.permute.xlu1 %699 }
 0x23c   :  { %v446_v39 = vpop.f32.mrb[4].mxu1 }
 0x23d   :  { %v526_v40 = vsel %vm126_vm2, -1e+09, %v446_v39  ;;  %v4753_v41 = vpop.f32.mrb[5].mxu1 }
 0x23e   :  { %v529_v42 = vsel %vm528_vm3, %v526_v40, -inf }
 0x23f   :  { %530 = vmax.xlane.f32.xlu0 %v529_v42 }
 0x240   :  { %v522_v43 = vpop.f32.mrb[6].mxu1 }
 0x241   :  { %v527_v44 = vsel %vm127_vm4, -1e+09, %v522_v43  ;;  %v4758_v45 = vpop.f32.mrb[7].mxu1 }
 0x242   :  { %v532_v46 = vsel %vm528_vm3, %v527_v44, -inf }
 0x243   :  { %533 = vmax.xlane.f32.xlu0 %v532_v46 }
 0x259   :  { %701 = vrot.lane.b32.xlu0 %v5630_v30, %s5431_s7 }
 0x2cc   :  { %v531_v47 = vpop.xlane.xlu0 %530 }
 0x2cd   :  { %v535_v48 = vsub.f32 %v526_v40, %v531_v47 }
 0x2cf   :  { %v537_v49 = vmul.f32 1.442695, %v535_v48 }
 0x2d0   :  { %v534_v50 = vpop.xlane.xlu0 %533 }
 0x2d1   :  { %5148 = vpow2.f32 %v537_v49  ;;  %v536_v51 = vsub.f32 %v527_v44, %v534_v50 }
 0x2d3   :  { %v539_v52 = vmul.f32 1.442695, %v536_v51 }
 0x2d4   :  { %v702_v2 = vpop.permute.xlu0 %701 }
 0x2d5   :  { %5150 = vpow2.f32 %v539_v52 }
 0x2db   :  { %v5149_v53 = vpop.eup %5148 }
 0x2dc   :  { %v541_v54 = vsel %vm528_vm3, %v5149_v53, 0.0 }
 0x2dd   :  { %542 = vadd.xlane.f32.xlu1 %v541_v54 }
 0x2df   :  { %v5151_v55 = vpop.eup %5150 }
 0x2e0   :  { %v544_v56 = vsel %vm528_vm3, %v5151_v55, 0.0 }
 0x2e1   :  { %545 = vadd.xlane.f32.xlu1 %v544_v56 }
 0x2f2   :  { %779 = vrot.lane.b32.xlu1 %v5636_v32, %s5431_s7 }
 0x2f6   :  { %777 = vrot.lane.b32.xlu1 %v5632_v31, %s5431_s7 }
 0x36a   :  { %v543_v58 = vpop.xlane.xlu1 %542 }
 0x36b   :  { %5152 = vrcp.f32 %v543_v58 }
 0x36e   :  { %v546_v59 = vpop.xlane.xlu1 %545 }
 0x36f   :  { %5154 = vrcp.f32 %v546_v59 }
 0x372   :  { %v780_v3 = vpop.permute.xlu1 %779 }
 0x375   :  { %v5153_v60 = vpop.eup %5152 }
 0x376   :  { %v549_v61 = vmul.f32 %v5153_v60, %v5149_v53  ;;  %v778_v4 = vpop.permute.xlu1 %777 }
 0x378   :  { %1730 = vst.msk [vmem:[#allocation15] sm:$0xff] %vm528_vm3, %v549_v61  ;;  %4762 = vmatmul.mubr.msk.f32.vlgmr.msra.gmra.mrb[8].mxu1 %vm528_vm3, %v549_v61 }
 0x379   :  { %v5155_v62 = vpop.eup %5154  ;;  %4765 = vmatpush3.msra.mxu1 %v5653_v35  ;;  %4766 = vmatprep.mubr.msk.f32.mxu1 %vm5430_vm0, %v5429_v1 }
 0x37a   :  { %v550_v63 = vmul.f32 %v5155_v62, %v5151_v55  ;;  %4769 = vmatprep.subr.mxu1 %v5429_v1 }
 0x37c   :  { %1731 = vst.msk [vmem:[#allocation15 + $0x8] sm:$0xff] %vm528_vm3, %v550_v63  ;;  %4767 = vmatmul.mubr.msk.f32.vlgmr.msra.gmra.mrb[10].mxu1 %vm528_vm3, %v550_v63 }
 0x37d   :  { %4771 = vmatprep.mubr.msk.f32.mxu1 %vm5430_vm0, %v5429_v1 }
 0x380   :  { %4770 = vmatpush3.xpose.msk.msra.mxu1 %vm373_vm1, %v702_v2 }
 0x381   :  { %4774 = vmatprep.subr.mxu1 %v5429_v1 }
 0x383   :  { %4772 = vmatmul.mubr.msk.f32.vlgmr.msra.gmra.mrb[12].mxu1 %vm373_vm1, %v700_v57 }
 0x384   :  { %4775 = vmatpush3.xpose.msk.msra.mxu1 %vm373_vm1, %v780_v3  ;;  %4776 = vmatprep.mubr.msk.f32.mxu1 %vm5430_vm0, %v5429_v1 }
 0x385   :  { %4779 = vmatprep.subr.mxu1 %v5429_v1 }
 0x387   :  { %4777 = vmatmul.mubr.msk.f32.vlgmr.msra.gmra.mrb[14].mxu1 %vm373_vm1, %v778_v4 }
 0x388   :  { %4781 = vmatprep.mubr.msk.f32.mxu1 %vm5430_vm0, %v5429_v1 }
 0x44b   :  { %v620_v5 = vpop.f32.mrb[8].mxu1 }
 0x44c   :  { %697 = vst.msk [vmem:[#allocation2] sm:$0xff] %vm373_vm1, %v620_v5  ;;  %v4763_v6 = vpop.f32.mrb[9].mxu1 }
 0x44f   :  { %v693_v7 = vpop.f32.mrb[10].mxu1 }
 0x450   :  { %698 = vst.msk [vmem:[#allocation2 + $0x8] sm:$0xff] %vm373_vm1, %v693_v7  ;;  %v4768_v8 = vpop.f32.mrb[11].mxu1 }
 0x456   :  { %v773_v9 = vpop.f32.mrb[12].mxu1 }
 0x457   :  { %v855_v10 = vsel %vm126_vm2, -1e+09, %v773_v9  ;;  %v4773_v11 = vpop.f32.mrb[13].mxu1 }
 0x458   :  { %v857_v12 = vsel %vm528_vm3, %v855_v10, -inf }
 0x459   :  { %858 = vmax.xlane.f32.xlu0 %v857_v12 }
 0x45a   :  { %v851_v13 = vpop.f32.mrb[14].mxu1 }
 0x45b   :  { %v856_v14 = vsel %vm127_vm4, -1e+09, %v851_v13  ;;  %v4778_v15 = vpop.f32.mrb[15].mxu1 }
 0x45c   :  { %v860_v16 = vsel %vm528_vm3, %v856_v14, -inf }
 0x45d   :  { %861 = vmax.xlane.f32.xlu1 %v860_v16 }
 0x46e   :  { %957 = vrot.lane.b32.xlu1 %v5653_v35, %s5431_s7 }
 0x472   :  { %1046 = vrot.lane.b32.xlu1 %v5630_v30, %s5420_s1 }
 0x476   :  { %1124 = vrot.lane.b32.xlu1 %v5636_v32, %s5420_s1 }
 0x47a   :  { %1122 = vrot.lane.b32.xlu1 %v5632_v31, %s5420_s1 }
 0x4e6   :  { %v859_v17 = vpop.xlane.xlu0 %858 }
 0x4e7   :  { %v863_v18 = vsub.f32 %v855_v10, %v859_v17 }
 0x4e9   :  { %v865_v19 = vmul.f32 1.442695, %v863_v18 }
 0x4ea   :  { %v862_v20 = vpop.xlane.xlu1 %861 }
 0x4eb   :  { %5156 = vpow2.f32 %v865_v19  ;;  %v864_v27 = vsub.f32 %v856_v14, %v862_v20 }
 0x4ed   :  { %v867_v28 = vmul.f32 1.442695, %v864_v27 }
 0x4ee   :  { %v958_v21 = vpop.permute.xlu1 %957 }
 0x4ef   :  { %5158 = vpow2.f32 %v867_v28 }
 0x4f2   :  { %v1047_v22 = vpop.permute.xlu1 %1046 }
 0x4f3   :  { %4790 = vmatpush3.xpose.msk.msra.mxu0 %vm373_vm1, %v1047_v22 }
 0x4f4   :  { %4799 = vmatprep.subr.mxu0 %v5429_v1 }
 0x4f5   :  { %v5157_v25 = vpop.eup %5156 }
 0x4f6   :  { %v869_v26 = vsel %vm528_vm3, %v5157_v25, 0.0  ;;  %v1125_v46 = vpop.permute.xlu1 %1124 }
 0x4f7   :  { %870 = vadd.xlane.f32.xlu0 %v869_v26 }
 0x4f9   :  { %v5159_v34 = vpop.eup %5158 }
 0x4fa   :  { %v872_v36 = vsel %vm528_vm3, %v5159_v34, 0.0  ;;  %v1123_v48 = vpop.permute.xlu1 %1122 }
 0x50d   :  { %880 = vrot.lane.b32.xlu0 %v5650_v33, %s5431_s7 }
 0x52c   :  { %873 = vadd.xlane.f32.xlu0 %v872_v36 }
 0x542   :  { %1044 = vrot.lane.b32.xlu0 %v5626_v29, %s5420_s1 }
 0x584   :  { %v871_v39 = vpop.xlane.xlu0 %870 }
 0x585   :  { %5160 = vrcp.f32 %v871_v39 }
 0x588   :  { %v881_v40 = vpop.permute.xlu0 %880 }
 0x589   :  { %4780 = vmatpush3.msra.mxu1 %v881_v40 }
 0x58a   :  { %4784 = vmatprep.subr.mxu1 %v5429_v1 }
 0x58f   :  { %v5161_v41 = vpop.eup %5160 }
 0x590   :  { %v877_v42 = vmul.f32 %v5161_v41, %v5157_v25 }
 0x592   :  { %1732 = vst.msk [vmem:[#allocation15 + $0x10] sm:$0xff] %vm528_vm3, %v877_v42  ;;  %4782 = vmatmul.mubr.msk.f32.vlgmr.msra.gmra.mrb[16].mxu1 %vm528_vm3, %v877_v42 }
 0x593   :  { %4785 = vmatpush3.msra.mxu1 %v958_v21  ;;  %4786 = vmatprep.mubr.msk.f32.mxu1 %vm5430_vm0, %v5429_v1 }
 0x594   :  { %4794 = vmatprep.subr.mxu1 %v5429_v1 }
 0x5b9   :  { %v874_v43 = vpop.xlane.xlu0 %873 }
 0x5ba   :  { %5162 = vrcp.f32 %v874_v43 }
 0x5bd   :  { %v1045_v44 = vpop.permute.xlu0 %1044 }
 0x5be   :  { %4792 = vmatmul.mubr.msk.f32.vlgmr.msra.gmra.mrb[4].mxu0 %vm373_vm1, %v1045_v44 }
 0x5bf   :  { %4801 = vmatprep.mubr.msk.f32.mxu0 %vm5430_vm0, %v5429_v1 }
 0x5c4   :  { %v5163_v45 = vpop.eup %5162 }
 0x5c5   :  { %v878_v47 = vmul.f32 %v5163_v45, %v5159_v34 }
 0x5c7   :  { %1733 = vst.msk [vmem:[#allocation15 + $0x18] sm:$0xff] %vm528_vm3, %v878_v47  ;;  %4787 = vmatmul.mubr.msk.f32.vlgmr.msra.gmra.mrb[18].mxu1 %vm528_vm3, %v878_v47 }
 0x5c8   :  { %4795 = vmatpush3.xpose.msk.msra.mxu1 %vm373_vm1, %v1125_v46  ;;  %4796 = vmatprep.mubr.msk.f32.mxu1 %vm5430_vm0, %v5429_v1 }
 0x5c9   :  { %4804 = vmatprep.subr.mxu1 %v5429_v1 }
 0x5cb   :  { %4797 = vmatmul.mubr.msk.f32.vlgmr.msra.gmra.mrb[20].mxu1 %vm373_vm1, %v1123_v48 }
 0x5cc   :  { %4806 = vmatprep.mubr.msk.f32.mxu1 %vm5430_vm0, %v5429_v1 }
 0x665   :  { %v5738_v49 = vpop.f32.mrb[16].mxu1 }
 0x666   :  { %v4783_v50 = vpop.f32.mrb[17].mxu1 }
 0x691   :  { %v1118_v51 = vpop.f32.mrb[4].mxu0 }
 0x692   :  { %v1200_v52 = vsel %vm126_vm2, -1e+09, %v1118_v51  ;;  %v4793_v53 = vpop.f32.mrb[5].mxu0 }
 0x693   :  { %v1202_v54 = vsel %vm528_vm3, %v1200_v52, -inf }
 0x694   :  { %1203 = vmax.xlane.f32.xlu0 %v1202_v54 }
 0x69a   :  { %v5743_v55 = vpop.f32.mrb[18].mxu1 }
 0x69b   :  { %v4788_v56 = vpop.f32.mrb[19].mxu1 }
 0x69e   :  { %v1196_v57 = vpop.f32.mrb[20].mxu1 }
 0x69f   :  { %v1201_v58 = vsel %vm127_vm4, -1e+09, %v1196_v57  ;;  %v4798_v59 = vpop.f32.mrb[21].mxu1 }
 0x6a0   :  { %v1205_v60 = vsel %vm528_vm3, %v1201_v58, -inf  ;;  %v5020_v59 = vld [vmem:[#allocation9] sm:$0xff]  }
 0x6a1   :  { %1206 = vmax.xlane.f32.xlu1 %v1205_v60  ;;  %v5021_v60 = vld [vmem:[#allocation9 + $0x8] sm:$0xff]  }
 0x6b2   :  { %1300 = vrot.lane.b32.xlu1 %v5653_v35, %s5420_s1 }
 0x6b6   :  { %1389 = vrot.lane.b32.xlu1 %v5630_v30, %s5432_s18 }
 0x6ba   :  { %1467 = vrot.lane.b32.xlu1 %v5636_v32, %s5432_s18 }
 0x6be   :  { %1465 = vrot.lane.b32.xlu1 %v5632_v31, %s5432_s18 }
 0x721   :  { %v1204_v61 = vpop.xlane.xlu0 %1203 }
 0x722   :  { %v1208_v62 = vsub.f32 %v1200_v52, %v1204_v61  ;;  %v5022_v61 = vld [vmem:[#allocation9 + $0x10] sm:$0xff]  }
 0x724   :  { %v1210_v63 = vmul.f32 1.442695, %v1208_v62  ;;  %v5023_v62 = vld [vmem:[#allocation9 + $0x18] sm:$0xff]  }
 0x726   :  { %5164 = vpow2.f32 %v1210_v63  ;;  %v5024_v63 = vld [vmem:[#allocation9 + $0x20] sm:$0xff]  }
 0x72e   :  { %v1207_v2 = vpop.xlane.xlu1 %1206 }
 0x72f   :  { %v1209_v30 = vsub.f32 %v1201_v58, %v1207_v2  ;;  %v5025_v2 = vld [vmem:[#allocation9 + $0x28] sm:$0xff]  }
 0x730   :  { %v5165_v3 = vpop.eup %5164 }
 0x731   :  { %v1214_v4 = vsel %vm528_vm3, %v5165_v3, 0.0  ;;  %v1212_v32 = vmul.f32 1.442695, %v1209_v30 }
 0x732   :  { %1215 = vadd.xlane.f32.xlu0 %v1214_v4  ;;  %v1301_v5 = vpop.permute.xlu1 %1300  ;;  %v5027_v4 = vld [vmem:[#allocation9 + $0x38] sm:$0xff]  }
 0x733   :  { %4805 = vmatpush3.msra.mxu1 %v1301_v5  ;;  %5166 = vpow2.f32 %v1212_v32 }
 0x734   :  { %4814 = vmatprep.subr.mxu1 %v5429_v1 }
 0x736   :  { %v1390_v11 = vpop.permute.xlu1 %1389 }
 0x73a   :  { %v1468_v14 = vpop.permute.xlu1 %1467 }
 0x73d   :  { %v5167_v31 = vpop.eup %5166 }
 0x73e   :  { %v1217_v6 = vsel %vm528_vm3, %v5167_v31, 0.0  ;;  %v1466_v16 = vpop.permute.xlu1 %1465 }
 0x748   :  { %1224 = vrot.lane.b32.xlu0 %v5650_v33, %s5420_s1 }
 0x767   :  { %1218 = vadd.xlane.f32.xlu0 %v1217_v6 }
 0x77d   :  { %1387 = vrot.lane.b32.xlu0 %v5626_v29, %s5432_s18 }
 0x7bf   :  { %v1216_v7 = vpop.xlane.xlu0 %1215 }
 0x7c0   :  { %5168 = vrcp.f32 %v1216_v7 }
 0x7c3   :  { %v1225_v8 = vpop.permute.xlu0 %1224 }
 0x7c4   :  { %4800 = vmatpush3.msra.mxu0 %v1225_v8 }
 0x7c5   :  { %4809 = vmatprep.subr.mxu0 %v5429_v1 }
 0x7ca   :  { %v5169_v9 = vpop.eup %5168 }
 0x7cb   :  { %v1222_v10 = vmul.f32 %v5169_v9, %v5165_v3  ;;  %v5026_v3 = vld [vmem:[#allocation9 + $0x30] sm:$0xff]  }
 0x7cd   :  { %1734 = vst.msk [vmem:[#allocation15 + $0x20] sm:$0xff] %vm528_vm3, %v1222_v10  ;;  %4802 = vmatmul.mubr.msk.f32.vlgmr.msra.gmra.mrb[6].mxu0 %vm528_vm3, %v1222_v10 }
 0x7ce   :  { %4810 = vmatpush3.xpose.msk.msra.mxu0 %vm373_vm1, %v1390_v11  ;;  %4811 = vmatprep.mubr.msk.f32.mxu0 %vm5430_vm0, %v5429_v1 }
 0x7cf   :  { %4819 = vmatprep.subr.mxu0 %v5429_v1 }
 0x7f4   :  { %v1219_v29 = vpop.xlane.xlu0 %1218 }
 0x7f5   :  { %5170 = vrcp.f32 %v1219_v29 }
 0x7f8   :  { %v1388_v12 = vpop.permute.xlu0 %1387 }
 0x7f9   :  { %4812 = vmatmul.mubr.msk.f32.vlgmr.msra.gmra.mrb[8].mxu0 %vm373_vm1, %v1388_v12 }
 0x7fa   :  { %4821 = vmatprep.mubr.msk.f32.mxu0 %vm5430_vm0, %v5429_v1 }
 0x7ff   :  { %v5171_v13 = vpop.eup %5170 }
 0x800   :  { %v1223_v15 = vmul.f32 %v5171_v13, %v5167_v31 }
 0x802   :  { %1735 = vst.msk [vmem:[#allocation15 + $0x28] sm:$0xff] %vm528_vm3, %v1223_v15  ;;  %4807 = vmatmul.mubr.msk.f32.vlgmr.msra.gmra.mrb[22].mxu1 %vm528_vm3, %v1223_v15 }
 0x803   :  { %4815 = vmatpush3.xpose.msk.msra.mxu1 %vm373_vm1, %v1468_v14  ;;  %4816 = vmatprep.mubr.msk.f32.mxu1 %vm5430_vm0, %v5429_v1 }
 0x804   :  { %4824 = vmatprep.subr.mxu1 %v5429_v1 }
 0x806   :  { %4817 = vmatmul.mubr.msk.f32.vlgmr.msra.gmra.mrb[24].mxu1 %vm373_vm1, %v1466_v16  ;;  %v5028_v16 = vld [vmem:[#allocation11] ss:$8 sps:$4 sm:$0xff]  }
 0x807   :  { %4826 = vmatprep.mubr.msk.f32.mxu1 %vm5430_vm0, %v5429_v1 }
 0x8a0   :  { %v1296_v17 = vpop.f32.mrb[6].mxu0 }
 0x8a1   :  { %v4803_v18 = vpop.f32.mrb[7].mxu0 }
 0x8a2   :  { %v5033_v18 = vld [vmem:[#allocation11 + $0x14] ss:$8 sps:$4 sm:$0xff]  }
 0x8cc   :  { %v1461_v19 = vpop.f32.mrb[8].mxu0 }
 0x8cd   :  { %v1543_v20 = vsel %vm126_vm2, -1e+09, %v1461_v19  ;;  %v4813_v21 = vpop.f32.mrb[9].mxu0  ;;  %v5031_v19 = vld [vmem:[#allocation11 + $0x10] ss:$8 sps:$4 sm:$0xff]  }
 0x8ce   :  { %v1545_v22 = vsel %vm528_vm3, %v1543_v20, -inf }
 0x8cf   :  { %1546 = vmax.xlane.f32.xlu0 %v1545_v22 }
 0x8d5   :  { %v1372_v25 = vpop.f32.mrb[22].mxu1 }
 0x8d6   :  { %v4808_v26 = vpop.f32.mrb[23].mxu1 }
 0x8d9   :  { %v1539_v27 = vpop.f32.mrb[24].mxu1 }
 0x8da   :  { %v1544_v28 = vsel %vm127_vm4, -1e+09, %v1539_v27  ;;  %v4818_v34 = vpop.f32.mrb[25].mxu1 }
 0x8db   :  { %v1548_v36 = vsel %vm528_vm3, %v1544_v28, -inf  ;;  %v5034_v34 = vld [vmem:[#allocation11 + $0x20] ss:$8 sps:$4 sm:$0xff]  }
 0x8dc   :  { %1549 = vmax.xlane.f32.xlu1 %v1548_v36  ;;  %v5039_v36 = vld [vmem:[#allocation11 + $0x34] ss:$8 sps:$4 sm:$0xff]  }
 0x8ed   :  { %1643 = vrot.lane.b32.xlu1 %v5653_v35, %s5432_s18 }
 0x8f1   :  { %1035 = vrot.lane.b32.xlu1 %v5738_v49, %s5432_s18 }
 0x8f5   :  { %1037 = vrot.lane.b32.xlu1 %v5743_v55, %s5432_s18 }
 0x8f9   :  { %1380 = vrot.lane.b32.xlu1 %v1372_v25, %s5420_s1 }
 0x95c   :  { %v1547_v39 = vpop.xlane.xlu0 %1546 }
 0x95d   :  { %v1551_v40 = vsub.f32 %v1543_v20, %v1547_v39  ;;  %v5037_v39 = vld [vmem:[#allocation11 + $0x30] ss:$8 sps:$4 sm:$0xff]  }
 0x95f   :  { %v1553_v41 = vmul.f32 1.442695, %v1551_v40  ;;  %v5042_v40 = vld [vmem:[#allocation11 + $0x44] ss:$8 sps:$4 sm:$0xff]  }
 0x961   :  { %5172 = vpow2.f32 %v1553_v41  ;;  %v5040_v41 = vld [vmem:[#allocation11 + $0x40] ss:$8 sps:$4 sm:$0xff]  }
 0x969   :  { %v1550_v42 = vpop.xlane.xlu1 %1549 }
 0x96a   :  { %v1552_v43 = vsub.f32 %v1544_v28, %v1550_v42  ;;  %v5036_v28 = vld [vmem:[#allocation11 + $0x24] ss:$8 sps:$4 sm:$0xff]   ;;  %v5045_v42 = vld [vmem:[#allocation11 + $0x54] ss:$8 sps:$4 sm:$0xff]  }
 0x96b   :  { %v5173_v44 = vpop.eup %5172 }
 0x96c   :  { %v1555_v45 = vmul.f32 1.442695, %v1552_v43  ;;  %v1557_v46 = vsel %vm528_vm3, %v5173_v44, 0.0  ;;  %v5043_v43 = vld [vmem:[#allocation11 + $0x50] ss:$8 sps:$4 sm:$0xff]  }
 0x96d   :  { %1558 = vadd.xlane.f32.xlu0 %v1557_v46  ;;  %v1644_v35 = vpop.permute.xlu1 %1643  ;;  %v5051_v46 = vld [vmem:[#allocation11 + $0x74] ss:$8 sps:$4 sm:$0xff]  }
 0x96e   :  { %5174 = vpow2.f32 %v1555_v45  ;;  %4825 = vmatpush3.msra.mxu1 %v1644_v35  ;;  %v5046_v45 = vld [vmem:[#allocation11 + $0x60] ss:$8 sps:$4 sm:$0xff]   ;;  %v5049_v35 = vld [vmem:[#allocation11 + $0x70] ss:$8 sps:$4 sm:$0xff]  }
 0x971   :  { %v1036_v47 = vpop.permute.xlu1 %1035 }
 0x972   :  { %1042 = vst.msk [vmem:[#allocation2] sm:$0xff] %vm1041_vm5, %v1036_v47  ;;  %v5052_v47 = vld [vmem:[#allocation12 + $0x40] sm:$0xff]  }
 0x975   :  { %v1038_v48 = vpop.permute.xlu1 %1037 }
 0x976   :  { %1043 = vst.msk [vmem:[#allocation2 + $0x8] sm:$0xff] %vm1041_vm5, %v1038_v48  ;;  %v5053_v48 = vld [vmem:[#allocation12] sm:$0xff]  }
 0x978   :  { %v5175_v49 = vpop.eup %5174 }
 0x979   :  { %v1381_v50 = vpop.permute.xlu1 %1380  ;;  %v1560_v51 = vsel %vm528_vm3, %v5175_v49, 0.0 }
 0x97a   :  { %1386 = vst.msk [vmem:[#allocation2 + $0x8] sm:$0xff] %vm1384_vm6, %v1381_v50  ;;  %1561 = vadd.xlane.f32.xlu0 %v1560_v51  ;;  %v5055_v50 = vld [vmem:[#allocation12 + $0x8] sm:$0xff]   ;;  %v5056_v51 = vld [vmem:[#allocation12 + $0x50] sm:$0xff]  }
 0x990   :  { %1567 = vrot.lane.b32.xlu0 %v5650_v33, %s5432_s18 }
 0x994   :  { %1378 = vrot.lane.b32.xlu0 %v1296_v17, %s5420_s1  ;;  %v5030_v17 = vld [vmem:[#allocation11 + $0x4] ss:$8 sps:$4 sm:$0xff]  }
 0x995   :  { %1984 = vmatprep.subr.bf16.mxu1 %v5030_v17 }
 0x9fa   :  { %v1559_v52 = vpop.xlane.xlu0 %1558 }
 0x9fb   :  { %5176 = vrcp.f32 %v1559_v52  ;;  %v5057_v52 = vld [vmem:[#allocation12 + $0x10] sm:$0xff]  }
 0xa05   :  { %v5177_v53 = vpop.eup %5176 }
 0xa06   :  { %v1565_v54 = vmul.f32 %v5177_v53, %v5173_v44  ;;  %v5048_v44 = vld [vmem:[#allocation11 + $0x64] ss:$8 sps:$4 sm:$0xff]   ;;  %v5058_v53 = vld [vmem:[#allocation12 + $0x58] sm:$0xff]  }
 0xa07   :  { %v1562_v55 = vpop.xlane.xlu0 %1561 }
 0xa08   :  { %1736 = vst.msk [vmem:[#allocation15 + $0x30] sm:$0xff] %vm528_vm3, %v1565_v54  ;;  %5178 = vrcp.f32 %v1562_v55  ;;  %v5060_v55 = vld [vmem:[#allocation12 + $0x60] sm:$0xff]  }
 0xa0b   :  { %v1568_v56 = vpop.permute.xlu0 %1567 }
 0xa0c   :  { %4820 = vmatpush3.msra.mxu0 %v1568_v56  ;;  %v5061_v56 = vld [vmem:[#allocation12 + $0x20] sm:$0xff]  }
 0xa0d   :  { %4822 = vmatmul.mubr.msk.f32.vlgmr.msra.gmra.mrb[10].mxu0 %vm528_vm3, %v1565_v54  ;;  %4829 = vmatprep.subr.bf16.mxu0 %v5429_v1  ;;  %v5059_v54 = vld [vmem:[#allocation12 + $0x18] sm:$0xff]  }
 0xa0e   :  { %4845 = vmatprep.mubr.msk.bf16.mxu0 %vm5430_vm0, %v5429_v1  ;;  %4830 = vmatpush3.bf16.msra.mxu0 %v5020_v59 }
 0xa0f   :  { %v1379_v33 = vpop.permute.xlu0 %1378  ;;  %4831 = vmatprep.subr.bf16.mxu0 %v5429_v1 }
 0xa10   :  { %1385 = vst.msk [vmem:[#allocation2] sm:$0xff] %vm1384_vm6, %v1379_v33  ;;  %v5062_v33 = vld [vmem:[#allocation12 + $0x68] sm:$0xff]  }
 0xa12   :  { %v5179_v57 = vpop.eup %5178  ;;  %4832 = vmatpush3.bf16.msra.mxu0 %v5021_v60 }
 0xa13   :  { %v1566_v58 = vmul.f32 %v5179_v57, %v5175_v49  ;;  %4833 = vmatprep.subr.bf16.mxu0 %v5429_v1  ;;  %v5054_v49 = vld [vmem:[#allocation12 + $0x48] sm:$0xff]  }
 0xa14   :  { %v5063_v57 = vld [vmem:[#allocation12 + $0x28] sm:$0xff]  }
 0xa15   :  { %1737 = vst.msk [vmem:[#allocation15 + $0x38] sm:$0xff] %vm528_vm3, %v1566_v58  ;;  %4827 = vmatmul.mubr.msk.f32.vlgmr.msra.gmra.mrb[26].mxu1 %vm528_vm3, %v1566_v58 }
 0xa16   :  { %2016 = vmatprep.mubr.bf16.mxu1 %v5428_v0  ;;  %4834 = vmatpush3.bf16.msra.mxu0 %v5022_v61 }
 0xa17   :  { %4835 = vmatprep.subr.bf16.mxu0 %v5429_v1  ;;  %1985 = vmatpush1.bf16.msra.mxu1 %v5028_v16 }
 0xa18   :  { %1986 = vmatprep.subr.bf16.mxu1 %v5033_v18 }
 0xa1a   :  { %4836 = vmatpush3.bf16.msra.mxu0 %v5023_v62 }
 0xa1b   :  { %4837 = vmatprep.subr.bf16.mxu0 %v5429_v1  ;;  %1987 = vmatpush1.bf16.msra.mxu1 %v5031_v19 }
 0xa1c   :  { %1988 = vmatprep.subr.bf16.mxu1 %v5036_v28 }
 0xa1e   :  { %4838 = vmatpush3.bf16.msra.mxu0 %v5024_v63 }
 0xa1f   :  { %4839 = vmatprep.subr.bf16.mxu0 %v5429_v1  ;;  %1989 = vmatpush1.bf16.msra.mxu1 %v5034_v34 }
 0xa20   :  { %1990 = vmatprep.subr.bf16.mxu1 %v5039_v36 }
 0xa22   :  { %4840 = vmatpush3.bf16.msra.mxu0 %v5025_v2 }
 0xa23   :  { %4841 = vmatprep.subr.bf16.mxu0 %v5429_v1  ;;  %1991 = vmatpush1.bf16.msra.mxu1 %v5037_v39  ;;  %v5068_v39 = vld [vmem:[#allocation8 + $0xc0] ss:$12 sps:$4 sm:$0xff]  }
 0xa24   :  { %1992 = vmatprep.subr.bf16.mxu1 %v5042_v40  ;;  %v5070_v40 = vld [vmem:[#allocation8 + $0xc4] ss:$12 sps:$4 sm:$0xff]  }
 0xa26   :  { %4842 = vmatpush3.bf16.msra.mxu0 %v5026_v3 }
 0xa27   :  { %4843 = vmatprep.subr.bf16.mxu0 %v5429_v1  ;;  %1993 = vmatpush1.bf16.msra.mxu1 %v5040_v41  ;;  %v5071_v41 = vld [vmem:[#allocation8 + $0xc8] ss:$12 sps:$4 sm:$0xff]  }
 0xa28   :  { %1994 = vmatprep.subr.bf16.mxu1 %v5045_v42  ;;  %v5074_v42 = vld [vmem:[#allocation8 + $0xdc] ss:$12 sps:$4 sm:$0xff]  }
 0xa2a   :  { %4844 = vmatpush3.bf16.msra.mxu0 %v5027_v4  ;;  %v4453_v4 = vld [vmem:[%s6119_s4] ss:$0 sm:$0xff] }
 0xa2b   :  { %1995 = vmatpush1.bf16.msra.mxu1 %v5043_v43  ;;  %4635 = vmatprep.subr.bf16.mxu0 %v5052_v47  ;;  %v5075_v43 = vld [vmem:[#allocation8 + $0xe0] ss:$12 sps:$4 sm:$0xff]  }
 0xa2c   :  { %1996 = vmatprep.subr.bf16.mxu1 %v5048_v44  ;;  %v5072_v44 = vld [vmem:[#allocation8 + $0xd8] ss:$12 sps:$4 sm:$0xff]  }
 0xa2f   :  { %1997 = vmatpush1.bf16.msra.mxu1 %v5046_v45 }
 0xa30   :  { %1998 = vmatprep.subr.bf16.mxu1 %v5051_v46 }
 0xa33   :  { %1999 = vmatpush1.bf16.msra.mxu1 %v5049_v35 }
 0xa34   :  { %2404 = vmatprep.subr.bf16.mxu1 %v5070_v40 }
 0xae0   :  { %v1639_v5 = vpop.f32.mrb[10].mxu0 }
 0xae1   :  { %1721 = vrot.lane.b32.xlu0 %v1639_v5, %s5431_s7  ;;  %v4823_v30 = vpop.f32.mrb[11].mxu0 }
 0xae8   :  { %v1715_v32 = vpop.f32.mrb[26].mxu1 }
 0xae9   :  { %1723 = vrot.lane.b32.xlu1 %v1715_v32, %s5431_s7  ;;  %v4828_v31 = vpop.f32.mrb[27].mxu1 }
 0xaea   :  { %v4454_v31 = vld [vmem:[%s6120_s5] ss:$0 sm:$0xff] }
 0xb53   :  { %v1722_v6 = vpop.permute.xlu0 %1721 }
 0xb54   :  { %1728 = vst.msk [vmem:[#allocation2] sm:$0xff] %vm1727_vm7, %v1722_v6 }
 0xb5b   :  { %v1724_v7 = vpop.permute.xlu1 %1723  ;;  %v1738_v8 = vld [vmem:[#allocation2] sm:$0xff] }
 0xb5c   :  { %1729 = vst.msk [vmem:[#allocation2 + $0x8] sm:$0xff] %vm1727_vm7, %v1724_v7 }
 0xb63   :  { %v1739_v9 = vld [vmem:[#allocation2 + $0x8] sm:$0xff] }
 0xb64   :  { %v1740_v10 = vpack.c.bf16 %v1739_v9, %v1738_v8 }
 0xb66   :  { %4846 = vmatmul.mubr.bf16.vlgmr.msra.gmra.mrb[12].mxu0 %v1740_v10  ;;  %v5064_v10 = vld [vmem:[#allocation12 + $0x70] sm:$0xff]  }
 0xb67   :  { %4636 = vmatpush3.bf16.msra.mxu0 %v5053_v48 }
 0xb68   :  { %4637 = vmatprep.subr.bf16.mxu0 %v5054_v49 }
 0xb6b   :  { %4638 = vmatpush3.bf16.msra.mxu0 %v5055_v50 }
 0xb6c   :  { %4639 = vmatprep.subr.bf16.mxu0 %v5056_v51 }
 0xb6f   :  { %4640 = vmatpush3.bf16.msra.mxu0 %v5057_v52  ;;  %v5078_v52 = vld [vmem:[#allocation8 + $0xf4] ss:$12 sps:$4 sm:$0xff]  }
 0xb70   :  { %4641 = vmatprep.subr.bf16.mxu0 %v5058_v53  ;;  %v5076_v53 = vld [vmem:[#allocation8 + $0xf0] ss:$12 sps:$4 sm:$0xff]  }
 0xb73   :  { %4642 = vmatpush3.bf16.msra.mxu0 %v5059_v54  ;;  %v5079_v54 = vld [vmem:[#allocation8 + $0xf8] ss:$12 sps:$4 sm:$0xff]  }
 0xb74   :  { %4643 = vmatprep.subr.bf16.mxu0 %v5060_v55  ;;  %v5082_v55 = vld [vmem:[#allocation8 + $0x10c] ss:$12 sps:$4 sm:$0xff]  }
 0xb77   :  { %4644 = vmatpush3.bf16.msra.mxu0 %v5061_v56  ;;  %v5080_v56 = vld [vmem:[#allocation8 + $0x108] ss:$12 sps:$4 sm:$0xff]  }
 0xb78   :  { %4645 = vmatprep.subr.bf16.mxu0 %v5062_v33  ;;  %v5083_v33 = vld [vmem:[#allocation8 + $0x110] ss:$12 sps:$4 sm:$0xff]  }
 0xb7b   :  { %4646 = vmatpush3.bf16.msra.mxu0 %v5063_v57  ;;  %v5086_v57 = vld [vmem:[#allocation8 + $0x124] ss:$12 sps:$4 sm:$0xff]  }
 0xb7c   :  { %4647 = vmatprep.subr.bf16.mxu0 %v5064_v10 }
 0xc39   :  { %v1839_v11 = vpop.f32.mrb[12].mxu0 }
 0xc3a   :  { %v1840_v29 = vadd.f32 %v1839_v11, %v5610_v23  ;;  %v4847_v12 = vpop.f32.mrb[13].mxu0  ;;  %v5065_v11 = vld [vmem:[#allocation12 + $0x30] sm:$0xff]  }
 0xc3b   :  { %v1842_v13 = vpop.f32.mrb[14].mxu0  ;;  %4648 = vmatpush3.bf16.msra.mxu0 %v5065_v11  ;;  %v5067_v12 = vld [vmem:[#allocation12 + $0x38] sm:$0xff]   ;;  %v4487_v11 = vld [vmem:[%s6123_s8] ss:$0 sm:$0xff] }
 0xc3c   :  { %v1843_v14 = vadd.f32 %v1842_v13, %v5612_v24  ;;  %1848 = vadd.xlane.f32.xlu0 %v1840_v29  ;;  %v4848_v15 = vpop.f32.mrb[15].mxu0 }
 0xc3e   :  { %1850 = vadd.xlane.f32.xlu1 %v1843_v14 }
 0xcc9   :  { %v1849_v20 = vpop.xlane.xlu0 %1848 }
 0xcca   :  { %v1853_v21 = vmul.f32 0.0078125, %v1849_v20 }
 0xccb   :  { %v1851_v22 = vpop.xlane.xlu1 %1850 }
 0xccc   :  { %v5825_v25 = vsub.f32 %v1840_v29, %v1853_v21  ;;  %v1854_v23 = vmul.f32 0.0078125, %v1851_v22  ;;  %v5066_v29 = vld [vmem:[#allocation12 + $0x78] sm:$0xff]  }
 0xccd   :  { %4649 = vmatprep.subr.bf16.mxu0 %v5066_v29 }
 0xcce   :  { %v5827_v26 = vsub.f32 %v1843_v14, %v1854_v23  ;;  %v1857_v24 = vmul.f32 %v5825_v25, %v5825_v25  ;;  %4650 = vmatpush3.bf16.msra.mxu0 %v5067_v12 }
 0xccf   :  { %4849 = vmatprep.subr.bf16.mxu0 %v5429_v1 }
 0xcd0   :  { %1859 = vadd.xlane.f32.xlu0 %v1857_v24  ;;  %v1858_v27 = vmul.f32 %v5827_v26, %v5827_v26 }
 0xcd4   :  { %1861 = vadd.xlane.f32.xlu0 %v1858_v27 }
 0xd5d   :  { %v1860_v58 = vpop.xlane.xlu0 %1859 }
 0xd5e   :  { %v1863_v59 = vmul.f32 0.0078125, %v1860_v58  ;;  %v5084_v58 = vld [vmem:[#allocation8 + $0x120] ss:$12 sps:$4 sm:$0xff]  }
 0xd60   :  { %v1865_v60 = vadd.f32 1e-05, %v1863_v59  ;;  %v5087_v59 = vld [vmem:[#allocation8 + $0x128] ss:$12 sps:$4 sm:$0xff]  }
 0xd61   :  { %v1862_v61 = vpop.xlane.xlu0 %1861 }
 0xd62   :  { %5180 = vrsqrt.f32 %v1865_v60  ;;  %v1864_v62 = vmul.f32 0.0078125, %v1862_v61  ;;  %v5090_v60 = vld [vmem:[#allocation8 + $0x13c] ss:$12 sps:$4 sm:$0xff]   ;;  %v5088_v61 = vld [vmem:[#allocation8 + $0x138] ss:$12 sps:$4 sm:$0xff]  }
 0xd64   :  { %v1866_v63 = vadd.f32 1e-05, %v1864_v62  ;;  %v5091_v62 = vld [vmem:[#allocation8 + $0x140] ss:$12 sps:$4 sm:$0xff]  }
 0xd66   :  { %5182 = vrsqrt.f32 %v1866_v63  ;;  %v5094_v63 = vld [vmem:[#allocation8 + $0x154] ss:$12 sps:$4 sm:$0xff]  }
 0xd6c   :  { %v5181_v2 = vpop.eup %5180 }
 0xd6d   :  { %v1869_v3 = vmul.f32 %v5181_v2, %v5825_v25  ;;  %v5092_v2 = vld [vmem:[#allocation8 + $0x150] ss:$12 sps:$4 sm:$0xff]  }
 0xd6f   :  { %v1877_v32 = vmul.f32 %v4453_v4, %v1869_v3  ;;  %v5095_v3 = vld [vmem:[#allocation8 + $0x158] ss:$12 sps:$4 sm:$0xff]  }
 0xd70   :  { %v5183_v5 = vpop.eup %5182 }
 0xd71   :  { %v1870_v30 = vmul.f32 %v5183_v5, %v5827_v26  ;;  %v1885_v7 = vadd.f32 %v4454_v31, %v1877_v32  ;;  %v5096_v5 = vld [vmem:[#allocation8 + $0x168] ss:$12 sps:$4 sm:$0xff]  }
 0xd73   :  { %v1878_v6 = vmul.f32 %v4453_v4, %v1870_v30  ;;  %v5098_v4 = vld [vmem:[#allocation8 + $0x16c] ss:$12 sps:$4 sm:$0xff]   ;;  %v5099_v30 = vld [vmem:[#allocation8 + $0x170] ss:$12 sps:$4 sm:$0xff]  }
 0xd75   :  { %v1886_v8 = vadd.f32 %v4454_v31, %v1878_v6 }
 0xd77   :  { %v1887_v9 = vpack.c.bf16 %v1886_v8, %v1885_v7 }
 0xd79   :  { %2017 = vmatmul.mubr.bf16.vlgmr.msra.gmra.mrb[28].mxu1 %v1887_v9 }
 0xd7a   :  { %2436 = vmatprep.mubr.bf16.mxu1 %v5428_v0  ;;  %2405 = vmatpush1.bf16.msra.mxu1 %v5068_v39 }
 0xd7b   :  { %2406 = vmatprep.subr.bf16.mxu1 %v5074_v42 }
 0xd7e   :  { %2407 = vmatpush1.bf16.msra.mxu1 %v5072_v44 }
 0xd7f   :  { %2408 = vmatprep.subr.bf16.mxu1 %v5078_v52 }
 0xd82   :  { %2409 = vmatpush1.bf16.msra.mxu1 %v5076_v53 }
 0xd83   :  { %2410 = vmatprep.subr.bf16.mxu1 %v5082_v55 }
 0xd86   :  { %2411 = vmatpush1.bf16.msra.mxu1 %v5080_v56 }
 0xd87   :  { %2412 = vmatprep.subr.bf16.mxu1 %v5086_v57 }
 0xd8a   :  { %2413 = vmatpush1.bf16.msra.mxu1 %v5084_v58 }
 0xd8b   :  { %2414 = vmatprep.subr.bf16.mxu1 %v5090_v60 }
 0xd8e   :  { %2415 = vmatpush1.bf16.msra.mxu1 %v5088_v61 }
 0xd8f   :  { %2416 = vmatprep.subr.bf16.mxu1 %v5094_v63 }
 0xd92   :  { %2417 = vmatpush1.bf16.msra.mxu1 %v5092_v2 }
 0xd93   :  { %2418 = vmatprep.subr.bf16.mxu1 %v5098_v4 }
 0xd96   :  { %2419 = vmatpush1.bf16.msra.mxu1 %v5096_v5 }
 0xd97   :  { %4869 = vmatprep.subr.mxu1 %v5429_v1 }
 0xe4c   :  { %v2018_v13 = vpop.f32.mrb[28].mxu1 }
 0xe4d   :  { %v2020_v14 = vpop.f32.mrb[29].mxu1  ;;  %v2027_v16 = vmax.f32 %v2018_v13, 0.0 }
 0xe4e   :  { %v2022_v15 = vpop.f32.mrb[30].mxu1  ;;  %v2028_v19 = vmax.f32 %v2020_v14, 0.0 }
 0xe4f   :  { %v2029_v17 = vmax.f32 %v2022_v15, 0.0  ;;  %v2024_v18 = vpop.f32.mrb[31].mxu1  ;;  %v4488_v15 = vld [vmem:[%s6124_s9] ss:$0 sm:$0xff] }
 0xe50   :  { %v2030_v20 = vmax.f32 %v2024_v18, 0.0 }
 0xe51   :  { %v2031_v21 = vpack.c.bf16 %v2029_v17, %v2027_v16 }
 0xe52   :  { %v2032_v22 = vpack.c.bf16 %v2030_v20, %v2028_v19 }
 0xe54   :  { %2193 = vmatprep.mubr.bf16.mxu0 %v2032_v22 }
 0xe55   :  { %2194 = vmatmul.mubr.bf16.vlgmr.msra.gmra.mrb[16].mxu0 %v2031_v21 }
 0xe56   :  { %4865 = vmatprep.mubr.msk.bf16.mxu0 %vm5430_vm0, %v5429_v1  ;;  %4850 = vmatpush3.bf16.msra.mxu0 %v5071_v41 }
 0xe57   :  { %4851 = vmatprep.subr.bf16.mxu0 %v5429_v1 }
 0xe5a   :  { %4852 = vmatpush3.bf16.msra.mxu0 %v5075_v43 }
 0xe5b   :  { %4853 = vmatprep.subr.bf16.mxu0 %v5429_v1 }
 0xe5e   :  { %4854 = vmatpush3.bf16.msra.mxu0 %v5079_v54 }
 0xe5f   :  { %4855 = vmatprep.subr.bf16.mxu0 %v5429_v1 }
 0xe62   :  { %4856 = vmatpush3.bf16.msra.mxu0 %v5083_v33 }
 0xe63   :  { %4857 = vmatprep.subr.bf16.mxu0 %v5429_v1 }
 0xe66   :  { %4858 = vmatpush3.bf16.msra.mxu0 %v5087_v59 }
 0xe67   :  { %4859 = vmatprep.subr.bf16.mxu0 %v5429_v1 }
 0xe6a   :  { %4860 = vmatpush3.bf16.msra.mxu0 %v5091_v62 }
 0xe6b   :  { %4861 = vmatprep.subr.bf16.mxu0 %v5429_v1 }
 0xe6e   :  { %4862 = vmatpush3.bf16.msra.mxu0 %v5095_v3 }
 0xe6f   :  { %4863 = vmatprep.subr.bf16.mxu0 %v5429_v1 }
 0xe72   :  { %4864 = vmatpush3.bf16.msra.mxu0 %v5099_v30 }
 0xe73   :  { %4909 = vmatprep.subr.mxu0 %v5429_v1 }
 0xf28   :  { %v4651_v25 = vpop.f32.mrb[16].mxu0 }
 0xf29   :  { %v4652_v23 = vpop.f32.mrb[17].mxu0 }
 0xf2a   :  { %v4653_v26 = vadd.f32 %v4652_v23, %v4651_v25  ;;  %v4654_v24 = vpop.f32.mrb[18].mxu0 }
 0xf2b   :  { %v4655_v27 = vpop.f32.mrb[19].mxu0 }
 0xf2c   :  { %v4656_v28 = vadd.f32 %v4655_v27, %v4654_v24  ;;  %v2196_v34 = vadd.f32 %v4653_v26, %v1885_v7 }
 0xf2e   :  { %2204 = vadd.xlane.f32.xlu0 %v2196_v34  ;;  %v2199_v36 = vadd.f32 %v4656_v28, %v1886_v8 }
 0xf30   :  { %2206 = vadd.xlane.f32.xlu1 %v2199_v36 }
 0xfbb   :  { %v2205_v45 = vpop.xlane.xlu0 %2204 }
 0xfbc   :  { %v2208_v46 = vmul.f32 0.0078125, %v2205_v45 }
 0xfbd   :  { %v2207_v35 = vpop.xlane.xlu1 %2206 }
 0xfbe   :  { %v2210_v47 = vsub.f32 %v2196_v34, %v2208_v46  ;;  %v2209_v48 = vmul.f32 0.0078125, %v2207_v35 }
 0xfc0   :  { %v2211_v49 = vsub.f32 %v2199_v36, %v2209_v48  ;;  %v2212_v50 = vmul.f32 %v2210_v47, %v2210_v47 }
 0xfc2   :  { %2214 = vadd.xlane.f32.xlu0 %v2212_v50  ;;  %v2213_v51 = vmul.f32 %v2211_v49, %v2211_v49 }
 0xfc4   :  { %2216 = vadd.xlane.f32.xlu1 %v2213_v51 }
0x104f   :  { %v2215_v32 = vpop.xlane.xlu0 %2214 }
0x1050   :  { %v2218_v31 = vmul.f32 0.0078125, %v2215_v32 }
0x1051   :  { %v2217_v6 = vpop.xlane.xlu1 %2216 }
0x1052   :  { %v2220_v7 = vadd.f32 1e-05, %v2218_v31  ;;  %v2219_v8 = vmul.f32 0.0078125, %v2217_v6 }
0x1054   :  { %5184 = vrsqrt.f32 %v2220_v7  ;;  %v2221_v9 = vadd.f32 1e-05, %v2219_v8 }
0x1056   :  { %5186 = vrsqrt.f32 %v2221_v9 }
0x105e   :  { %v5185_v10 = vpop.eup %5184 }
0x105f   :  { %v2224_v29 = vmul.f32 %v5185_v10, %v2210_v47 }
0x1060   :  { %v5187_v12 = vpop.eup %5186 }
0x1061   :  { %v2225_v13 = vmul.f32 %v5187_v12, %v2211_v49  ;;  %v2232_v14 = vmul.f32 %v4487_v11, %v2224_v29 }
0x1063   :  { %v2233_v16 = vmul.f32 %v4487_v11, %v2225_v13  ;;  %v5860_v17 = vadd.f32 %v4488_v15, %v2232_v14 }
0x1065   :  { %v5862_v18 = vadd.f32 %v4488_v15, %v2233_v16 }
0x1067   :  { %v2242_v19 = vpack.c.bf16 %v5862_v18, %v5860_v17 }
0x1069   :  { %2437 = vmatmul.mubr.bf16.vlgmr.msra.gmra.mrb[32].mxu1 %v2242_v19  ;;  %4866 = vmatmul.mubr.bf16.vlgmr.msra.gmra.mrb[20].mxu0 %v2242_v19 }
0x106a   :  { %4871 = vmatprep.mubr.msk.f32.mxu1 %vm5430_vm0, %v5429_v1  ;;  %4911 = vmatprep.mubr.msk.f32.mxu0 %vm5430_vm0, %v5429_v1 }
0x113c   :  { %v5870_v20 = vpop.f32.mrb[32].mxu1  ;;  %v5872_v21 = vpop.f32.mrb[20].mxu0 }
0x113d   :  { %v5874_v22 = vpop.f32.mrb[33].mxu1  ;;  %v4867_v25 = vpop.f32.mrb[21].mxu0 }
0x113e   :  { %v5876_v23 = vpop.f32.mrb[34].mxu1  ;;  %v5878_v26 = vpop.f32.mrb[22].mxu0  ;;  %4870 = vmatpush3.xpose.msk.msra.mxu1 %vm373_vm1, %v5874_v22 }
0x113f   :  { %v5882_v24 = vpop.f32.mrb[35].mxu1  ;;  %v4868_v27 = vpop.f32.mrb[23].mxu0  ;;  %4874 = vmatprep.subr.mxu1 %v5429_v1 }
0x1141   :  { %4872 = vmatmul.mubr.msk.f32.vlgmr.msra.gmra.mrb[36].mxu1 %vm373_vm1, %v5870_v20 }
0x1142   :  { %4875 = vmatpush3.xpose.msk.msra.mxu1 %vm373_vm1, %v5882_v24  ;;  %4876 = vmatprep.mubr.msk.f32.mxu1 %vm5430_vm0, %v5429_v1 }
0x1143   :  { %4879 = vmatprep.subr.mxu1 %v5429_v1 }
0x1145   :  { %4877 = vmatmul.mubr.msk.f32.vlgmr.msra.gmra.mrb[38].mxu1 %vm373_vm1, %v5876_v23 }
0x1146   :  { %4880 = vmatpush3.msra.mxu1 %v5872_v21  ;;  %4881 = vmatprep.mubr.msk.f32.mxu1 %vm5430_vm0, %v5429_v1 }
0x1147   :  { %4884 = vmatprep.subr.mxu1 %v5429_v1 }
0x1214   :  { %v2560_v28 = vpop.f32.mrb[36].mxu1 }
0x1215   :  { %v2640_v34 = vsel %vm126_vm2, -1e+09, %v2560_v28  ;;  %v4873_v36 = vpop.f32.mrb[37].mxu1 }
0x1216   :  { %v2642_v39 = vsel %vm528_vm3, %v2640_v34, -inf }
0x1217   :  { %2643 = vmax.xlane.f32.xlu0 %v2642_v39 }
0x1218   :  { %v2636_v40 = vpop.f32.mrb[38].mxu1 }
0x1219   :  { %v2641_v41 = vsel %vm127_vm4, -1e+09, %v2636_v40  ;;  %v4878_v42 = vpop.f32.mrb[39].mxu1 }
0x121a   :  { %v2645_v43 = vsel %vm528_vm3, %v2641_v41, -inf }
0x121b   :  { %2646 = vmax.xlane.f32.xlu1 %v2645_v43 }
0x122c   :  { %2812 = vrot.lane.b32.xlu1 %v5870_v20, %s5431_s7 }
0x12a4   :  { %v2644_v44 = vpop.xlane.xlu0 %2643 }
0x12a5   :  { %v2648_v45 = vsub.f32 %v2640_v34, %v2644_v44 }
0x12a7   :  { %v2650_v46 = vmul.f32 1.442695, %v2648_v45 }
0x12a8   :  { %v2647_v35 = vpop.xlane.xlu1 %2646 }
0x12a9   :  { %5188 = vpow2.f32 %v2650_v46  ;;  %v2649_v47 = vsub.f32 %v2641_v41, %v2647_v35 }
0x12ab   :  { %v2652_v48 = vmul.f32 1.442695, %v2649_v47 }
0x12ac   :  { %v2813_v53 = vpop.permute.xlu1 %2812 }
0x12ad   :  { %5190 = vpow2.f32 %v2652_v48 }
0x12b3   :  { %v5189_v49 = vpop.eup %5188 }
0x12b4   :  { %v2654_v50 = vsel %vm528_vm3, %v5189_v49, 0.0 }
0x12b5   :  { %2655 = vadd.xlane.f32.xlu0 %v2654_v50 }
0x12b7   :  { %v5191_v51 = vpop.eup %5190 }
0x12b8   :  { %v2657_v52 = vsel %vm528_vm3, %v5191_v51, 0.0 }
0x12b9   :  { %2658 = vadd.xlane.f32.xlu1 %v2657_v52 }
0x12ca   :  { %2892 = vrot.lane.b32.xlu1 %v5882_v24, %s5431_s7 }
0x12cb   :  { %2814 = vrot.lane.b32.xlu0 %v5874_v22, %s5431_s7 }
0x12ce   :  { %2890 = vrot.lane.b32.xlu1 %v5876_v23, %s5431_s7 }
0x1342   :  { %v2656_v54 = vpop.xlane.xlu0 %2655 }
0x1343   :  { %5192 = vrcp.f32 %v2656_v54 }
0x1346   :  { %v2659_v55 = vpop.xlane.xlu1 %2658  ;;  %v2815_v59 = vpop.permute.xlu0 %2814 }
0x1347   :  { %5194 = vrcp.f32 %v2659_v55 }
0x134a   :  { %v2893_v60 = vpop.permute.xlu1 %2892 }
0x134d   :  { %v5193_v56 = vpop.eup %5192 }
0x134e   :  { %v2662_v33 = vmul.f32 %v5193_v56, %v5189_v49  ;;  %v2891_v61 = vpop.permute.xlu1 %2890 }
0x1350   :  { %3841 = vst.msk [vmem:[#allocation15 + $0x40] sm:$0xff] %vm528_vm3, %v2662_v33  ;;  %4882 = vmatmul.mubr.msk.f32.vlgmr.msra.gmra.mrb[40].mxu1 %vm528_vm3, %v2662_v33 }
0x1351   :  { %v5195_v57 = vpop.eup %5194  ;;  %4885 = vmatpush3.msra.mxu1 %v5878_v26  ;;  %4886 = vmatprep.mubr.msk.f32.mxu1 %vm5430_vm0, %v5429_v1 }
0x1352   :  { %v2663_v58 = vmul.f32 %v5195_v57, %v5191_v51  ;;  %4889 = vmatprep.subr.mxu1 %v5429_v1 }
0x1354   :  { %3842 = vst.msk [vmem:[#allocation15 + $0x48] sm:$0xff] %vm528_vm3, %v2663_v58  ;;  %4887 = vmatmul.mubr.msk.f32.vlgmr.msra.gmra.mrb[42].mxu1 %vm528_vm3, %v2663_v58 }
0x1355   :  { %4891 = vmatprep.mubr.msk.f32.mxu1 %vm5430_vm0, %v5429_v1 }
0x1358   :  { %4890 = vmatpush3.xpose.msk.msra.mxu1 %vm373_vm1, %v2815_v59 }
0x1359   :  { %4894 = vmatprep.subr.mxu1 %v5429_v1 }
0x135b   :  { %4892 = vmatmul.mubr.msk.f32.vlgmr.msra.gmra.mrb[44].mxu1 %vm373_vm1, %v2813_v53 }
0x135c   :  { %4895 = vmatpush3.xpose.msk.msra.mxu1 %vm373_vm1, %v2893_v60  ;;  %4896 = vmatprep.mubr.msk.f32.mxu1 %vm5430_vm0, %v5429_v1 }
0x135d   :  { %4899 = vmatprep.subr.mxu1 %v5429_v1 }
0x135f   :  { %4897 = vmatmul.mubr.msk.f32.vlgmr.msra.gmra.mrb[46].mxu1 %vm373_vm1, %v2891_v61 }
0x1360   :  { %4901 = vmatprep.mubr.msk.f32.mxu1 %vm5430_vm0, %v5429_v1 }
0x1423   :  { %v2733_v62 = vpop.f32.mrb[40].mxu1 }
0x1424   :  { %2810 = vst.msk [vmem:[#allocation2] sm:$0xff] %vm373_vm1, %v2733_v62  ;;  %v4883_v63 = vpop.f32.mrb[41].mxu1 }
0x1427   :  { %v2806_v2 = vpop.f32.mrb[42].mxu1 }
0x1428   :  { %2811 = vst.msk [vmem:[#allocation2 + $0x8] sm:$0xff] %vm373_vm1, %v2806_v2  ;;  %v4888_v3 = vpop.f32.mrb[43].mxu1 }
0x142e   :  { %v2886_v4 = vpop.f32.mrb[44].mxu1 }
0x142f   :  { %v2968_v5 = vsel %vm126_vm2, -1e+09, %v2886_v4  ;;  %v4893_v30 = vpop.f32.mrb[45].mxu1 }
0x1430   :  { %v2970_v32 = vsel %vm528_vm3, %v2968_v5, -inf }
0x1431   :  { %2971 = vmax.xlane.f32.xlu0 %v2970_v32 }
0x1432   :  { %v2964_v31 = vpop.f32.mrb[46].mxu1 }
0x1433   :  { %v2969_v6 = vsel %vm127_vm4, -1e+09, %v2964_v31  ;;  %v4898_v7 = vpop.f32.mrb[47].mxu1 }
0x1434   :  { %v2973_v8 = vsel %vm528_vm3, %v2969_v6, -inf }
0x1435   :  { %2974 = vmax.xlane.f32.xlu1 %v2973_v8 }
0x1446   :  { %3070 = vrot.lane.b32.xlu1 %v5878_v26, %s5431_s7 }
0x144a   :  { %3158 = vrot.lane.b32.xlu1 %v5874_v22, %s5420_s1 }
0x144e   :  { %3236 = vrot.lane.b32.xlu1 %v5882_v24, %s5420_s1 }
0x1452   :  { %3234 = vrot.lane.b32.xlu1 %v5876_v23, %s5420_s1 }
0x14be   :  { %v2972_v9 = vpop.xlane.xlu0 %2971 }
0x14bf   :  { %v2976_v10 = vsub.f32 %v2968_v5, %v2972_v9 }
0x14c1   :  { %v2978_v11 = vmul.f32 1.442695, %v2976_v10 }
0x14c2   :  { %v2975_v29 = vpop.xlane.xlu1 %2974 }
0x14c3   :  { %5196 = vpow2.f32 %v2978_v11  ;;  %v2977_v16 = vsub.f32 %v2969_v6, %v2975_v29 }
0x14c5   :  { %v2980_v19 = vmul.f32 1.442695, %v2977_v16 }
0x14c6   :  { %v3071_v12 = vpop.permute.xlu1 %3070 }
0x14c7   :  { %5198 = vpow2.f32 %v2980_v19 }
0x14ca   :  { %v3159_v13 = vpop.permute.xlu1 %3158 }
0x14cb   :  { %4910 = vmatpush3.xpose.msk.msra.mxu0 %vm373_vm1, %v3159_v13 }
0x14cc   :  { %4919 = vmatprep.subr.mxu0 %v5429_v1 }
0x14cd   :  { %v5197_v14 = vpop.eup %5196 }
0x14ce   :  { %v2982_v15 = vsel %vm528_vm3, %v5197_v14, 0.0  ;;  %v3237_v43 = vpop.permute.xlu1 %3236 }
0x14cf   :  { %2983 = vadd.xlane.f32.xlu0 %v2982_v15 }
0x14d1   :  { %v5199_v25 = vpop.eup %5198 }
0x14d2   :  { %v2985_v27 = vsel %vm528_vm3, %v5199_v25, 0.0  ;;  %v3235_v45 = vpop.permute.xlu1 %3234 }
0x14e5   :  { %2993 = vrot.lane.b32.xlu0 %v5872_v21, %s5431_s7 }
0x1504   :  { %2986 = vadd.xlane.f32.xlu0 %v2985_v27 }
0x151a   :  { %3156 = vrot.lane.b32.xlu0 %v5870_v20, %s5420_s1 }
0x155c   :  { %v2984_v28 = vpop.xlane.xlu0 %2983 }
0x155d   :  { %5200 = vrcp.f32 %v2984_v28 }
0x1560   :  { %v2994_v34 = vpop.permute.xlu0 %2993 }
0x1561   :  { %4900 = vmatpush3.msra.mxu1 %v2994_v34 }
0x1562   :  { %4904 = vmatprep.subr.mxu1 %v5429_v1 }
0x1567   :  { %v5201_v36 = vpop.eup %5200 }
0x1568   :  { %v2990_v39 = vmul.f32 %v5201_v36, %v5197_v14 }
0x156a   :  { %3843 = vst.msk [vmem:[#allocation15 + $0x50] sm:$0xff] %vm528_vm3, %v2990_v39  ;;  %4902 = vmatmul.mubr.msk.f32.vlgmr.msra.gmra.mrb[48].mxu1 %vm528_vm3, %v2990_v39 }
0x156b   :  { %4905 = vmatpush3.msra.mxu1 %v3071_v12  ;;  %4906 = vmatprep.mubr.msk.f32.mxu1 %vm5430_vm0, %v5429_v1 }
0x156c   :  { %4914 = vmatprep.subr.mxu1 %v5429_v1 }
0x1591   :  { %v2987_v40 = vpop.xlane.xlu0 %2986 }
0x1592   :  { %5202 = vrcp.f32 %v2987_v40 }
0x1595   :  { %v3157_v41 = vpop.permute.xlu0 %3156 }
0x1596   :  { %4912 = vmatmul.mubr.msk.f32.vlgmr.msra.gmra.mrb[24].mxu0 %vm373_vm1, %v3157_v41 }
0x1597   :  { %4921 = vmatprep.mubr.msk.f32.mxu0 %vm5430_vm0, %v5429_v1 }
0x159c   :  { %v5203_v42 = vpop.eup %5202 }
0x159d   :  { %v2991_v44 = vmul.f32 %v5203_v42, %v5199_v25 }
0x159f   :  { %3844 = vst.msk [vmem:[#allocation15 + $0x58] sm:$0xff] %vm528_vm3, %v2991_v44  ;;  %4907 = vmatmul.mubr.msk.f32.vlgmr.msra.gmra.mrb[50].mxu1 %vm528_vm3, %v2991_v44 }
0x15a0   :  { %4915 = vmatpush3.xpose.msk.msra.mxu1 %vm373_vm1, %v3237_v43  ;;  %4916 = vmatprep.mubr.msk.f32.mxu1 %vm5430_vm0, %v5429_v1 }
0x15a1   :  { %4924 = vmatprep.subr.mxu1 %v5429_v1 }
0x15a3   :  { %4917 = vmatmul.mubr.msk.f32.vlgmr.msra.gmra.mrb[52].mxu1 %vm373_vm1, %v3235_v45 }
0x15a4   :  { %4926 = vmatprep.mubr.msk.f32.mxu1 %vm5430_vm0, %v5429_v1 }
0x163d   :  { %v5976_v46 = vpop.f32.mrb[48].mxu1 }
0x163e   :  { %v4903_v35 = vpop.f32.mrb[49].mxu1 }
0x1669   :  { %v3230_v47 = vpop.f32.mrb[24].mxu0 }
0x166a   :  { %v3312_v48 = vsel %vm126_vm2, -1e+09, %v3230_v47  ;;  %v4913_v49 = vpop.f32.mrb[25].mxu0 }
0x166b   :  { %v3314_v50 = vsel %vm528_vm3, %v3312_v48, -inf }
0x166c   :  { %3315 = vmax.xlane.f32.xlu0 %v3314_v50 }
0x1672   :  { %v5981_v51 = vpop.f32.mrb[50].mxu1 }
0x1673   :  { %v4908_v52 = vpop.f32.mrb[51].mxu1 }
0x1676   :  { %v3308_v53 = vpop.f32.mrb[52].mxu1 }
0x1677   :  { %v3313_v54 = vsel %vm127_vm4, -1e+09, %v3308_v53  ;;  %v4918_v55 = vpop.f32.mrb[53].mxu1  ;;  %v5100_v53 = vld [vmem:[#allocation9 + $0x40] sm:$0xff]  }
0x1678   :  { %v3317_v56 = vsel %vm528_vm3, %v3313_v54, -inf  ;;  %v5102_v55 = vld [vmem:[#allocation9 + $0x50] sm:$0xff]  }
0x1679   :  { %3318 = vmax.xlane.f32.xlu1 %v3317_v56  ;;  %v5103_v56 = vld [vmem:[#allocation9 + $0x58] sm:$0xff]  }
0x168a   :  { %3412 = vrot.lane.b32.xlu1 %v5878_v26, %s5420_s1 }
0x168e   :  { %3500 = vrot.lane.b32.xlu1 %v5874_v22, %s5432_s18 }
0x1692   :  { %3578 = vrot.lane.b32.xlu1 %v5882_v24, %s5432_s18 }
0x1696   :  { %3576 = vrot.lane.b32.xlu1 %v5876_v23, %s5432_s18 }
0x16f9   :  { %v3316_v33 = vpop.xlane.xlu0 %3315 }
0x16fa   :  { %v3320_v57 = vsub.f32 %v3312_v48, %v3316_v33  ;;  %v5104_v33 = vld [vmem:[#allocation9 + $0x60] sm:$0xff]  }
0x16fc   :  { %v3322_v58 = vmul.f32 1.442695, %v3320_v57  ;;  %v5105_v57 = vld [vmem:[#allocation9 + $0x68] sm:$0xff]  }
0x16fe   :  { %5204 = vpow2.f32 %v3322_v58  ;;  %v5107_v58 = vld [vmem:[#allocation9 + $0x78] sm:$0xff]  }
0x1706   :  { %v3319_v59 = vpop.xlane.xlu1 %3318 }
0x1707   :  { %v3321_v22 = vsub.f32 %v3313_v54, %v3319_v59  ;;  %v5101_v54 = vld [vmem:[#allocation9 + $0x48] sm:$0xff]  }
0x1708   :  { %v5205_v60 = vpop.eup %5204 }
0x1709   :  { %v3326_v61 = vsel %vm528_vm3, %v5205_v60, 0.0  ;;  %v3324_v24 = vmul.f32 1.442695, %v3321_v22 }
0x170a   :  { %3327 = vadd.xlane.f32.xlu0 %v3326_v61  ;;  %v3413_v62 = vpop.permute.xlu1 %3412 }
0x170b   :  { %4925 = vmatpush3.msra.mxu1 %v3413_v62  ;;  %5206 = vpow2.f32 %v3324_v24 }
0x170c   :  { %4934 = vmatprep.subr.mxu1 %v5429_v1 }
0x170e   :  { %v3501_v30 = vpop.permute.xlu1 %3500 }
0x1712   :  { %v3579_v6 = vpop.permute.xlu1 %3578 }
0x1715   :  { %v5207_v23 = vpop.eup %5206 }
0x1716   :  { %v3329_v63 = vsel %vm528_vm3, %v5207_v23, 0.0  ;;  %v3577_v8 = vpop.permute.xlu1 %3576 }
0x1720   :  { %3336 = vrot.lane.b32.xlu0 %v5872_v21, %s5420_s1 }
0x173f   :  { %3330 = vadd.xlane.f32.xlu0 %v3329_v63 }
0x1755   :  { %3498 = vrot.lane.b32.xlu0 %v5870_v20, %s5432_s18 }
0x1797   :  { %v3328_v2 = vpop.xlane.xlu0 %3327 }
0x1798   :  { %5208 = vrcp.f32 %v3328_v2 }
0x179b   :  { %v3337_v3 = vpop.permute.xlu0 %3336 }
0x179c   :  { %4920 = vmatpush3.msra.mxu0 %v3337_v3 }
0x179d   :  { %4929 = vmatprep.subr.mxu0 %v5429_v1 }
0x17a2   :  { %v5209_v4 = vpop.eup %5208 }
0x17a3   :  { %v3334_v5 = vmul.f32 %v5209_v4, %v5205_v60 }
0x17a5   :  { %3845 = vst.msk [vmem:[#allocation15 + $0x60] sm:$0xff] %vm528_vm3, %v3334_v5  ;;  %4922 = vmatmul.mubr.msk.f32.vlgmr.msra.gmra.mrb[26].mxu0 %vm528_vm3, %v3334_v5 }
0x17a6   :  { %4930 = vmatpush3.xpose.msk.msra.mxu0 %vm373_vm1, %v3501_v30  ;;  %4931 = vmatprep.mubr.msk.f32.mxu0 %vm5430_vm0, %v5429_v1 }
0x17a7   :  { %4939 = vmatprep.subr.mxu0 %v5429_v1 }
0x17cc   :  { %v3331_v20 = vpop.xlane.xlu0 %3330 }
0x17cd   :  { %5210 = vrcp.f32 %v3331_v20 }
0x17d0   :  { %v3499_v32 = vpop.permute.xlu0 %3498 }
0x17d1   :  { %4932 = vmatmul.mubr.msk.f32.vlgmr.msra.gmra.mrb[28].mxu0 %vm373_vm1, %v3499_v32  ;;  %v5108_v32 = vld [vmem:[#allocation11 + $0x80] ss:$8 sps:$4 sm:$0xff]  }
0x17d2   :  { %4941 = vmatprep.mubr.msk.f32.mxu0 %vm5430_vm0, %v5429_v1 }
0x17d7   :  { %v5211_v31 = vpop.eup %5210 }
0x17d8   :  { %v3335_v7 = vmul.f32 %v5211_v31, %v5207_v23  ;;  %v5110_v31 = vld [vmem:[#allocation11 + $0x84] ss:$8 sps:$4 sm:$0xff]  }
0x17da   :  { %3846 = vst.msk [vmem:[#allocation15 + $0x68] sm:$0xff] %vm528_vm3, %v3335_v7  ;;  %4927 = vmatmul.mubr.msk.f32.vlgmr.msra.gmra.mrb[54].mxu1 %vm528_vm3, %v3335_v7  ;;  %v5111_v7 = vld [vmem:[#allocation11 + $0x90] ss:$8 sps:$4 sm:$0xff]  }
0x17db   :  { %4935 = vmatpush3.xpose.msk.msra.mxu1 %vm373_vm1, %v3579_v6  ;;  %4936 = vmatprep.mubr.msk.f32.mxu1 %vm5430_vm0, %v5429_v1  ;;  %v5113_v6 = vld [vmem:[#allocation11 + $0x94] ss:$8 sps:$4 sm:$0xff]  }
0x17dc   :  { %4944 = vmatprep.subr.mxu1 %v5429_v1 }
0x17de   :  { %4937 = vmatmul.mubr.msk.f32.vlgmr.msra.gmra.mrb[56].mxu1 %vm373_vm1, %v3577_v8 }
0x17df   :  { %4946 = vmatprep.mubr.msk.f32.mxu1 %vm5430_vm0, %v5429_v1 }
0x1878   :  { %v3408_v9 = vpop.f32.mrb[26].mxu0 }
0x1879   :  { %v4923_v10 = vpop.f32.mrb[27].mxu0 }
0x18a4   :  { %v3572_v11 = vpop.f32.mrb[28].mxu0 }
0x18a5   :  { %v3654_v29 = vsel %vm126_vm2, -1e+09, %v3572_v11  ;;  %v4933_v12 = vpop.f32.mrb[29].mxu0 }
0x18a6   :  { %v3656_v13 = vsel %vm528_vm3, %v3654_v29, -inf }
0x18a7   :  { %3657 = vmax.xlane.f32.xlu0 %v3656_v13  ;;  %v5116_v13 = vld [vmem:[#allocation11 + $0xa4] ss:$8 sps:$4 sm:$0xff]  }
0x18ad   :  { %v3484_v14 = vpop.f32.mrb[54].mxu1 }
0x18ae   :  { %v4928_v15 = vpop.f32.mrb[55].mxu1 }
0x18af   :  { %v5119_v15 = vld [vmem:[#allocation11 + $0xb4] ss:$8 sps:$4 sm:$0xff]  }
0x18b1   :  { %v3650_v16 = vpop.f32.mrb[56].mxu1 }
0x18b2   :  { %v3655_v19 = vsel %vm127_vm4, -1e+09, %v3650_v16  ;;  %v4938_v25 = vpop.f32.mrb[57].mxu1  ;;  %v5117_v16 = vld [vmem:[#allocation11 + $0xb0] ss:$8 sps:$4 sm:$0xff]  }
0x18b3   :  { %v3659_v27 = vsel %vm528_vm3, %v3655_v19, -inf  ;;  %v5120_v25 = vld [vmem:[#allocation11 + $0xc0] ss:$8 sps:$4 sm:$0xff]  }
0x18b4   :  { %3660 = vmax.xlane.f32.xlu1 %v3659_v27  ;;  %v5125_v27 = vld [vmem:[#allocation11 + $0xd4] ss:$8 sps:$4 sm:$0xff]  }
0x18c5   :  { %3754 = vrot.lane.b32.xlu1 %v5878_v26, %s5432_s18 }
0x18c9   :  { %3148 = vrot.lane.b32.xlu1 %v5976_v46, %s5432_s18 }
0x18cd   :  { %3150 = vrot.lane.b32.xlu1 %v5981_v51, %s5432_s18 }
0x18d1   :  { %3492 = vrot.lane.b32.xlu1 %v3484_v14, %s5420_s1  ;;  %v5114_v14 = vld [vmem:[#allocation11 + $0xa0] ss:$8 sps:$4 sm:$0xff]  }
0x1934   :  { %v3658_v37 = vpop.xlane.xlu0 %3657 }
0x1935   :  { %v3662_v28 = vsub.f32 %v3654_v29, %v3658_v37  ;;  %v5123_v37 = vld [vmem:[#allocation11 + $0xd0] ss:$8 sps:$4 sm:$0xff]  }
0x1937   :  { %v3664_v34 = vmul.f32 1.442695, %v3662_v28  ;;  %v5128_v28 = vld [vmem:[#allocation11 + $0xe4] ss:$8 sps:$4 sm:$0xff]  }
0x1939   :  { %5212 = vpow2.f32 %v3664_v34  ;;  %v5126_v34 = vld [vmem:[#allocation11 + $0xe0] ss:$8 sps:$4 sm:$0xff]  }
0x1941   :  { %v3661_v38 = vpop.xlane.xlu1 %3660 }
0x1942   :  { %v3663_v36 = vsub.f32 %v3655_v19, %v3661_v38  ;;  %v5122_v19 = vld [vmem:[#allocation11 + $0xc4] ss:$8 sps:$4 sm:$0xff]   ;;  %v5131_v38 = vld [vmem:[#allocation11 + $0xf4] ss:$8 sps:$4 sm:$0xff]  }
0x1943   :  { %v5213_v39 = vpop.eup %5212 }
0x1944   :  { %v3666_v40 = vmul.f32 1.442695, %v3663_v36  ;;  %v3668_v41 = vsel %vm528_vm3, %v5213_v39, 0.0  ;;  %v5129_v36 = vld [vmem:[#allocation11 + $0xf0] ss:$8 sps:$4 sm:$0xff]  }
0x1945   :  { %3669 = vadd.xlane.f32.xlu0 %v3668_v41  ;;  %v3755_v26 = vpop.permute.xlu1 %3754  ;;  %v5134_v41 = vld [vmem:[#allocation12 + $0xc8] sm:$0xff]  }
0x1946   :  { %5214 = vpow2.f32 %v3666_v40  ;;  %4945 = vmatpush3.msra.mxu1 %v3755_v26  ;;  %v5133_v40 = vld [vmem:[#allocation12 + $0x80] sm:$0xff]   ;;  %v5135_v26 = vld [vmem:[#allocation12 + $0x88] sm:$0xff]  }
0x1947   :  { %4098 = vmatprep.subr.bf16.mxu1 %v5110_v31 }
0x1949   :  { %v3149_v42 = vpop.permute.xlu1 %3148 }
0x194a   :  { %3154 = vst.msk [vmem:[#allocation2] sm:$0xff] %vm1041_vm5, %v3149_v42  ;;  %v5136_v42 = vld [vmem:[#allocation12 + $0xd0] sm:$0xff]  }
0x194d   :  { %v3151_v43 = vpop.permute.xlu1 %3150 }
0x194e   :  { %3155 = vst.msk [vmem:[#allocation2 + $0x8] sm:$0xff] %vm1041_vm5, %v3151_v43  ;;  %v5137_v43 = vld [vmem:[#allocation12 + $0x90] sm:$0xff]  }
0x1950   :  { %v5215_v44 = vpop.eup %5214 }
0x1951   :  { %v3493_v45 = vpop.permute.xlu1 %3492  ;;  %v3671_v46 = vsel %vm528_vm3, %v5215_v44, 0.0 }
0x1952   :  { %3497 = vst.msk [vmem:[#allocation2 + $0x8] sm:$0xff] %vm1384_vm6, %v3493_v45  ;;  %3672 = vadd.xlane.f32.xlu0 %v3671_v46  ;;  %v5139_v45 = vld [vmem:[#allocation12 + $0x98] sm:$0xff]   ;;  %v5140_v46 = vld [vmem:[#allocation12 + $0xe0] sm:$0xff]  }
0x1968   :  { %3678 = vrot.lane.b32.xlu0 %v5872_v21, %s5432_s18 }
0x196c   :  { %3490 = vrot.lane.b32.xlu0 %v3408_v9, %s5420_s1 }
0x19d2   :  { %v3670_v35 = vpop.xlane.xlu0 %3669 }
0x19d3   :  { %5216 = vrcp.f32 %v3670_v35  ;;  %v5141_v35 = vld [vmem:[#allocation12 + $0xa0] sm:$0xff]  }
0x19dd   :  { %v5217_v47 = vpop.eup %5216 }
0x19de   :  { %v3676_v48 = vmul.f32 %v5217_v47, %v5213_v39  ;;  %v5132_v39 = vld [vmem:[#allocation12 + $0xc0] sm:$0xff]   ;;  %v5142_v47 = vld [vmem:[#allocation12 + $0xe8] sm:$0xff]  }
0x19df   :  { %v3673_v49 = vpop.xlane.xlu0 %3672 }
0x19e0   :  { %3847 = vst.msk [vmem:[#allocation15 + $0x70] sm:$0xff] %vm528_vm3, %v3676_v48  ;;  %5218 = vrcp.f32 %v3673_v49 }
0x19e3   :  { %v3679_v50 = vpop.permute.xlu0 %3678 }
0x19e4   :  { %4940 = vmatpush3.msra.mxu0 %v3679_v50 }
0x19e5   :  { %4942 = vmatmul.mubr.msk.f32.vlgmr.msra.gmra.mrb[30].mxu0 %vm528_vm3, %v3676_v48  ;;  %4949 = vmatprep.subr.bf16.mxu0 %v5429_v1  ;;  %v5143_v48 = vld [vmem:[#allocation12 + $0xa8] sm:$0xff]  }
0x19e6   :  { %4965 = vmatprep.mubr.msk.bf16.mxu0 %vm5430_vm0, %v5429_v1  ;;  %4950 = vmatpush3.bf16.msra.mxu0 %v5100_v53 }
0x19e7   :  { %v3491_v21 = vpop.permute.xlu0 %3490  ;;  %4951 = vmatprep.subr.bf16.mxu0 %v5429_v1 }
0x19e8   :  { %3496 = vst.msk [vmem:[#allocation2] sm:$0xff] %vm1384_vm6, %v3491_v21 }
0x19ea   :  { %v5219_v51 = vpop.eup %5218  ;;  %4952 = vmatpush3.bf16.msra.mxu0 %v5101_v54 }
0x19eb   :  { %v3677_v52 = vmul.f32 %v5219_v51, %v5215_v44  ;;  %4953 = vmatprep.subr.bf16.mxu0 %v5429_v1  ;;  %v5138_v44 = vld [vmem:[#allocation12 + $0xd8] sm:$0xff]  }
0x19ed   :  { %3848 = vst.msk [vmem:[#allocation15 + $0x78] sm:$0xff] %vm528_vm3, %v3677_v52  ;;  %4947 = vmatmul.mubr.msk.f32.vlgmr.msra.gmra.mrb[58].mxu1 %vm528_vm3, %v3677_v52 }
0x19ee   :  { %4130 = vmatprep.mubr.bf16.mxu1 %v5428_v0  ;;  %4954 = vmatpush3.bf16.msra.mxu0 %v5102_v55  ;;  %v5106_v0 = vld [vmem:[#allocation9 + $0x70] sm:$0xff]  }
0x19ef   :  { %4955 = vmatprep.subr.bf16.mxu0 %v5429_v1  ;;  %4099 = vmatpush1.bf16.msra.mxu1 %v5108_v32 }
0x19f0   :  { %4100 = vmatprep.subr.bf16.mxu1 %v5113_v6 }
0x19f2   :  { %4956 = vmatpush3.bf16.msra.mxu0 %v5103_v56  ;;  %v4547_v56 = vld [vmem:[%s6119_s4 + $0x1] ss:$0 sm:$0xff]  ;;  %s5433_s4 = smov [#allocation15]  }
0x19f3   :  { %4957 = vmatprep.subr.bf16.mxu0 %v5429_v1  ;;  %4101 = vmatpush1.bf16.msra.mxu1 %v5111_v7 }
0x19f4   :  { %4102 = vmatprep.subr.bf16.mxu1 %v5116_v13 }
0x19f6   :  { %4958 = vmatpush3.bf16.msra.mxu0 %v5104_v33 }
0x19f7   :  { %4959 = vmatprep.subr.bf16.mxu0 %v5429_v1  ;;  %4103 = vmatpush1.bf16.msra.mxu1 %v5114_v14 }
0x19f8   :  { %4104 = vmatprep.subr.bf16.mxu1 %v5119_v15 }
0x19fa   :  { %4960 = vmatpush3.bf16.msra.mxu0 %v5105_v57 }
0x19fb   :  { %4961 = vmatprep.subr.bf16.mxu0 %v5429_v1  ;;  %4105 = vmatpush1.bf16.msra.mxu1 %v5117_v16 }
0x19fc   :  { %4106 = vmatprep.subr.bf16.mxu1 %v5122_v19 }
0x19fe   :  { %4962 = vmatpush3.bf16.msra.mxu0 %v5106_v0 }
0x19ff   :  { %4963 = vmatprep.subr.bf16.mxu0 %v5429_v1  ;;  %4107 = vmatpush1.bf16.msra.mxu1 %v5120_v25 }
0x1a00   :  { %4108 = vmatprep.subr.bf16.mxu1 %v5125_v27 }
0x1a02   :  { %4964 = vmatpush3.bf16.msra.mxu0 %v5107_v58  ;;  %v4548_v58 = vld [vmem:[%s6120_s5 + $0x1] ss:$0 sm:$0xff]  ;;  %s4378_s5 = sshll.u32 %s5433_s4, 4  ;;  %s4379_s5 = int_to_ptr.vmem [resolvable:$true] %s4378_s5 }
0x1a03   :  { %4109 = vmatpush1.bf16.msra.mxu1 %v5123_v37  ;;  %4707 = vmatprep.subr.bf16.mxu0 %v5132_v39  ;;  %s5360_s0 = scalar_lea.vmem %s4379_s5, 2048  ;;  %p5365_p7 = scmp.lt.s32.totalorder %s4379_s5, %s4379_s5 }
0x1a04   :  { %4110 = vmatprep.subr.bf16.mxu1 %v5128_v28  ;;  %p5361_p6 = scmp.ne.s32.totalorder %s4379_s5, %s5360_s0  ;;  %p5366_p8 = scmp.lt.s32.totalorder %s5360_s0, %s5360_s0 }
0x1a06   :  { %p5367_p9 = por %p5366_p8, %p5365_p7 }
0x1a07   :  { %4111 = vmatpush1.bf16.msra.mxu1 %v5126_v34 }
0x1a08   :  { %4112 = vmatprep.subr.bf16.mxu1 %v5131_v38  ;;  %p5368_p10 = pnand %p5367_p9, %p5361_p6 }
0x1a0b   :  { %4113 = vmatpush1.bf16.msra.mxu1 %v5129_v36 }
0x1ab8   :  { %v3750_v59 = vpop.f32.mrb[30].mxu0 }
0x1ab9   :  { %3832 = vrot.lane.b32.xlu0 %v3750_v59, %s5431_s7  ;;  %v4943_v60 = vpop.f32.mrb[31].mxu0 }
0x1ac0   :  { %v3826_v61 = vpop.f32.mrb[58].mxu1 }
0x1ac1   :  { %3834 = vrot.lane.b32.xlu1 %v3826_v61, %s5431_s7  ;;  %v4948_v62 = vpop.f32.mrb[59].mxu1 }
0x1b2b   :  { %v3833_v22 = vpop.permute.xlu0 %3832 }
0x1b2c   :  { %3838 = vst.msk [vmem:[#allocation2] sm:$0xff] %vm1727_vm7, %v3833_v22  ;;  %v5144_v22 = vld [vmem:[#allocation12 + $0xf0] sm:$0xff]  }
0x1b33   :  { %v3835_v24 = vpop.permute.xlu1 %3834  ;;  %v3849_v23 = vld [vmem:[#allocation2] sm:$0xff] }
0x1b34   :  { %3839 = vst.msk [vmem:[#allocation2 + $0x8] sm:$0xff] %vm1727_vm7, %v3835_v24  ;;  %v5145_v24 = vld [vmem:[#allocation12 + $0xb0] sm:$0xff]  }
0x1b3b   :  { %v3850_v63 = vld [vmem:[#allocation2 + $0x8] sm:$0xff] }
0x1b3c   :  { %v3851_v2 = vpack.c.bf16 %v3850_v63, %v3849_v23  ;;  %v5146_v23 = vld [vmem:[#allocation12 + $0xf8] sm:$0xff]  }
0x1b3d   :  { %v5147_v63 = vld [vmem:[#allocation12 + $0xb8] sm:$0xff]  }
0x1b3e   :  { %4966 = vmatmul.mubr.bf16.vlgmr.msra.gmra.mrb[32].mxu0 %v3851_v2 }
0x1b3f   :  { %4708 = vmatpush3.bf16.msra.mxu0 %v5133_v40 }
0x1b40   :  { %4709 = vmatprep.subr.bf16.mxu0 %v5134_v41 }
0x1b43   :  { %4710 = vmatpush3.bf16.msra.mxu0 %v5135_v26 }
0x1b44   :  { %4711 = vmatprep.subr.bf16.mxu0 %v5136_v42 }
0x1b47   :  { %4712 = vmatpush3.bf16.msra.mxu0 %v5137_v43 }
0x1b48   :  { %4713 = vmatprep.subr.bf16.mxu0 %v5138_v44 }
0x1b4b   :  { %4714 = vmatpush3.bf16.msra.mxu0 %v5139_v45 }
0x1b4c   :  { %4715 = vmatprep.subr.bf16.mxu0 %v5140_v46 }
0x1b4f   :  { %4716 = vmatpush3.bf16.msra.mxu0 %v5141_v35 }
0x1b50   :  { %4717 = vmatprep.subr.bf16.mxu0 %v5142_v47 }
0x1b53   :  { %4718 = vmatpush3.bf16.msra.mxu0 %v5143_v48 }
0x1b54   :  { %4719 = vmatprep.subr.bf16.mxu0 %v5144_v22 }
0x1b57   :  { %4720 = vmatpush3.bf16.msra.mxu0 %v5145_v24 }
0x1b58   :  { %4721 = vmatprep.subr.bf16.mxu0 %v5146_v23 }
0x1b5b   :  { %4722 = vmatpush3.bf16.msra.mxu0 %v5147_v63 }
0x1c11   :  { %v3951_v1 = vpop.f32.mrb[32].mxu0 }
0x1c12   :  { %v3952_v3 = vadd.f32 %v3951_v1, %v5860_v17  ;;  %v4967_v4 = vpop.f32.mrb[33].mxu0 }
0x1c13   :  { %v3954_v5 = vpop.f32.mrb[34].mxu0 }
0x1c14   :  { %v3955_v30 = vadd.f32 %v3954_v5, %v5862_v18  ;;  %3962 = vadd.xlane.f32.xlu0 %v3952_v3  ;;  %v4968_v20 = vpop.f32.mrb[35].mxu0 }
0x1c16   :  { %3964 = vadd.xlane.f32.xlu1 %v3955_v30 }
0x1ca1   :  { %v3963_v8 = vpop.xlane.xlu0 %3962 }
0x1ca2   :  { %v3966_v9 = vmul.f32 0.0078125, %v3963_v8 }
0x1ca3   :  { %v3965_v10 = vpop.xlane.xlu1 %3964 }
0x1ca4   :  { %v6063_v11 = vsub.f32 %v3952_v3, %v3966_v9  ;;  %v3967_v17 = vmul.f32 0.0078125, %v3965_v10 }
0x1ca6   :  { %v6065_v29 = vsub.f32 %v3955_v30, %v3967_v17  ;;  %v3970_v18 = vmul.f32 %v6063_v11, %v6063_v11 }
0x1ca8   :  { %3972 = vadd.xlane.f32.xlu0 %v3970_v18  ;;  %v3971_v12 = vmul.f32 %v6065_v29, %v6065_v29 }
0x1cac   :  { %3974 = vadd.xlane.f32.xlu0 %v3971_v12 }
0x1d35   :  { %v3973_v49 = vpop.xlane.xlu0 %3972 }
0x1d36   :  { %v3976_v50 = vmul.f32 0.0078125, %v3973_v49 }
0x1d38   :  { %v3978_v21 = vadd.f32 1e-05, %v3976_v50 }
0x1d39   :  { %v3975_v51 = vpop.xlane.xlu0 %3974 }
0x1d3a   :  { %5220 = vrsqrt.f32 %v3978_v21  ;;  %v3977_v52 = vmul.f32 0.0078125, %v3975_v51 }
0x1d3c   :  { %v3979_v53 = vadd.f32 1e-05, %v3977_v52 }
0x1d3e   :  { %5222 = vrsqrt.f32 %v3979_v53 }
0x1d44   :  { %v5221_v54 = vpop.eup %5220 }
0x1d45   :  { %v3982_v55 = vmul.f32 %v5221_v54, %v6063_v11 }
0x1d47   :  { %v3990_v0 = vmul.f32 %v4547_v56, %v3982_v55 }
0x1d48   :  { %v5223_v33 = vpop.eup %5222 }
0x1d49   :  { %v3983_v57 = vmul.f32 %v5223_v33, %v6065_v29  ;;  %v3998_v60 = vadd.f32 %v4548_v58, %v3990_v0 }
0x1d4b   :  { %v3991_v59 = vmul.f32 %v4547_v56, %v3983_v57 }
0x1d4d   :  { %v3999_v61 = vadd.f32 %v4548_v58, %v3991_v59 }
0x1d4f   :  { %v4000_v62 = vpack.c.bf16 %v3999_v61, %v3998_v60 }
0x1d51   :  { %4131 = vmatmul.mubr.bf16.vlgmr.msra.gmra.mrb[60].mxu1 %v4000_v62 }
0x1e24   :  { %v4132_v2 = vpop.f32.mrb[60].mxu1 }
0x1e25   :  { %v4134_v1 = vpop.f32.mrb[61].mxu1  ;;  %v4141_v4 = vmax.f32 %v4132_v2, 0.0 }
0x1e26   :  { %v4136_v3 = vpop.f32.mrb[62].mxu1  ;;  %v4142_v20 = vmax.f32 %v4134_v1, 0.0 }
0x1e27   :  { %v4143_v5 = vmax.f32 %v4136_v3, 0.0  ;;  %v4138_v30 = vpop.f32.mrb[63].mxu1 }
0x1e28   :  { %v4144_v32 = vmax.f32 %v4138_v30, 0.0 }
0x1e29   :  { %v4145_v31 = vpack.c.bf16 %v4143_v5, %v4141_v4 }
0x1e2a   :  { %v4146_v6 = vpack.c.bf16 %v4144_v32, %v4142_v20 }
0x1e2c   :  { %4308 = vmatprep.mubr.bf16.mxu0 %v4146_v6 }
0x1e2d   :  { %4309 = vmatmul.mubr.bf16.vlgmr.msra.gmra.mrb[36].mxu0 %v4145_v31 }
0x1f00   :  { %v4723_v7 = vpop.f32.mrb[36].mxu0 }
0x1f01   :  { %v4724_v8 = vpop.f32.mrb[37].mxu0 }
0x1f02   :  { %v4725_v9 = vadd.f32 %v4724_v8, %v4723_v7  ;;  %v4726_v10 = vpop.f32.mrb[38].mxu0 }
0x1f03   :  { %v4727_v11 = vpop.f32.mrb[39].mxu0 }
0x1f04   :  { %v4728_v17 = vadd.f32 %v4727_v11, %v4726_v10  ;;  %v4311_v29 = vadd.f32 %v4725_v9, %v3998_v60 }
0x1f06   :  { %4321 = vadd.xlane.f32.xlu0 %v4311_v29  ;;  %v4314_v18 = vadd.f32 %v4728_v17, %v3999_v61 }
0x1f08   :  { %4323 = vadd.xlane.f32.xlu1 %v4314_v18 }
0x1f93   :  { %v4322_v12 = vpop.xlane.xlu0 %4321 }
0x1f94   :  { %v4325_v13 = vmul.f32 0.0078125, %v4322_v12 }
0x1f95   :  { %v4324_v14 = vpop.xlane.xlu1 %4323 }
0x1f96   :  { %v4327_v15 = vsub.f32 %v4311_v29, %v4325_v13  ;;  %v4326_v16 = vmul.f32 0.0078125, %v4324_v14 }
0x1f98   :  { %v4328_v19 = vsub.f32 %v4314_v18, %v4326_v16  ;;  %v4329_v25 = vmul.f32 %v4327_v15, %v4327_v15 }
0x1f9a   :  { %4331 = vadd.xlane.f32.xlu0 %v4329_v25  ;;  %v4330_v27 = vmul.f32 %v4328_v19, %v4328_v19 }
0x1f9c   :  { %4333 = vadd.xlane.f32.xlu1 %v4330_v27 }
0x1f9d   :  { %5371 = shalt.err (!%p5368_p10)
}
0x1f9e   :  { %s5372_s17 = scalar_lea.hbm %s6126_s11, 2048 }
0x1f9f   :  { %p5373_p11 = scmp.ne.s32.totalorder %s6126_s11, %s5372_s17  ;;  %p5376_p12 = scmp.lt.u32.totalorder %s5372_s17, %s6126_s11 }
0x1fa1   :  { %p5378_p13 = pnand %p5376_p12, %p5373_p11 }
0x1fa3   :  { %5381 = shalt.err (!%p5378_p13)
}
0x1fa4   :  { %4384 = dma.vmem_to_hbm [thread:$0]  %s4379_s5, 2048, %s6126_s11, [#allocation16], %s5418_s29, %s5418_s29, %s5419_s30  }
0x1fa5   :  { %v4583_v41 = vld [vmem:[%s6123_s8 + $0x1] ss:$0 sm:$0xff]  ;;  %s5434_s11 = smov [#allocation14]  }
0x1fa6   :  { %v4584_v43 = vld [vmem:[%s6124_s9 + $0x1] ss:$0 sm:$0xff]  ;;  %s4366_s25 = sshll.u32 %s5434_s11, 4  ;;  %s4367_s25 = int_to_ptr.vmem [resolvable:$true] %s4366_s25 }
0x1fa7   :  { %s5382_s26 = scalar_lea.vmem %s4367_s25, 256  ;;  %p5387_p1 = scmp.lt.s32.totalorder %s4367_s25, %s4367_s25 }
0x1fa8   :  { %p5383_p0 = scmp.ne.s32.totalorder %s4367_s25, %s5382_s26  ;;  %p5388_p2 = scmp.lt.s32.totalorder %s5382_s26, %s5382_s26 }
0x1faa   :  { %p5389_p3 = por %p5388_p2, %p5387_p1 }
0x1fac   :  { %p5390_p4 = pnand %p5389_p3, %p5383_p0 }
0x2027   :  { %v4332_v37 = vpop.xlane.xlu0 %4331 }
0x2028   :  { %v4335_v28 = vmul.f32 0.0078125, %v4332_v37 }
0x2029   :  { %v4334_v34 = vpop.xlane.xlu1 %4333 }
0x202a   :  { %v4337_v38 = vadd.f32 1e-05, %v4335_v28  ;;  %v4336_v36 = vmul.f32 0.0078125, %v4334_v34 }
0x202c   :  { %5224 = vrsqrt.f32 %v4337_v38  ;;  %v4338_v39 = vadd.f32 1e-05, %v4336_v36 }
0x202e   :  { %5226 = vrsqrt.f32 %v4338_v39 }
0x2036   :  { %v5225_v40 = vpop.eup %5224 }
0x2037   :  { %v4341_v26 = vmul.f32 %v5225_v40, %v4327_v15 }
0x2038   :  { %v5227_v42 = vpop.eup %5226 }
0x2039   :  { %v4342_v44 = vmul.f32 %v5227_v42, %v4328_v19  ;;  %v4349_v45 = vmul.f32 %v4583_v41, %v4341_v26 }
0x203b   :  { %v4350_v46 = vmul.f32 %v4583_v41, %v4342_v44  ;;  %v4357_v35 = vadd.f32 %v4584_v43, %v4349_v45 }
0x203d   :  { %v4358_v47 = vadd.f32 %v4584_v43, %v4350_v46  ;;  %4359 = vst [vmem:[#allocation14] sm:$0xff] %v4357_v35 }
0x203f   :  { %4360 = vst [vmem:[#allocation14 + $0x8] sm:$0xff] %v4358_v47 }
0x2040   :  { %5393 = shalt.err (!%p5390_p4)
}
0x2041   :  { %s5394_s9 = scalar_lea.hbm %s6125_s10, 256 }
0x2042   :  { %p5395_p5 = scmp.ne.s32.totalorder %s6125_s10, %s5394_s9  ;;  %p5398_p6 = scmp.lt.u32.totalorder %s5394_s9, %s6125_s10 }
0x2044   :  { %p5400_p7 = pnand %p5398_p6, %p5395_p5 }
0x2046   :  { %5403 = shalt.err (!%p5400_p7)
}
0x2047   :  { %4372 = dma.vmem_to_hbm [thread:$0]  %s4367_s25, 256, %s6125_s10, [#allocation5], %s5418_s29, %s5418_s29, %s5419_s30  }
0x2048   :  { %5412 = dma.done.wait [#allocation5], 256  }
0x2049   :  { %5413 = vsyncadd [#allocation5], 4294967040 }
0x204a   :  { %5414 = dma.done.wait [#allocation16], 2048  }
0x204b   :  { %5415 = vsyncadd [#allocation16], 4294965248 }
0x204c   :  { %4391 = vsyncpa [#allocation4], 1 }
0x204d   :  { %4392 = vsyncpa [#allocation7], 1 }
0x204e   :  { %4393 = vsyncpa [#allocation10], 1 }
0x204f   :  { %4394 = vsyncpa [#allocation13], 1 }
0x2050   :  { %4395 = vsyncpa [#allocation5], 1 }
0x2051   :  { %4396 = vsyncpa [#allocation16], 1 }

</bundles_post_ra>
